<compile_context>
chip_gen: v7x
topology: tpu7x:2x2x1
jax: 0.10.0
libtpu: 0.0.40
codegen_flags: <defaults>
</compile_context>

<pallas_src>
import functools

import jax
import jax.numpy as jnp
from jax import lax
from jax.experimental import pallas as pl
from jax.experimental.pallas import tpu as pltpu


def _round_up(x, m):
    return ((x + m - 1) // m) * m


def _vmem_capacity_bytes():
    try:
        cap = int(pltpu.get_tpu_info().vmem_capacity_bytes)
        if cap > 0:
            return cap
    except Exception:
        pass
    return 64 << 20  # conservative fallback: v7x per-TensorCore VMEM


# ----------------------------------------------------------------------------
# Stage 1: xw = inputs @ weight  (row-tiled; weight resident; lane-dense output)
# ----------------------------------------------------------------------------
def _xw_kernel(x_ref, w_ref, o_ref):
    o_ref[...] = jnp.dot(
        x_ref[...], w_ref[...], preferred_element_type=jnp.float32
    ).astype(o_ref.dtype)


# ----------------------------------------------------------------------------
# Stage 2: out = relu(adj @ xw), grid = (row tiles, K tiles)
#   adj_ref : (tm, tk)       streamed (the only O(N^2) HBM stream, read once)
#   xw_ref  : (tk, d_out_p)  resident when tk == N, streamed K-chunks otherwise
#   o_ref   : (tm, d_out_p)  lane-dense output tile
#   acc_ref : (tm, d_out_p)  f32 accumulator scratch
# ----------------------------------------------------------------------------
def _gcn_kernel(adj_ref, xw_ref, o_ref, acc_ref, *, n_cols, tk, mask_k):
    k = pl.program_id(1)

    @pl.when(k == 0)
    def _():
        acc_ref[...] = jnp.zeros_like(acc_ref)

    a = adj_ref[...]
    if mask_k:
        # Last K tile reaches past adj's real columns; the out-of-bounds region of
        # the input block is unspecified, so zero it (the matching xw rows are
        # explicit zeros, so masked terms contribute exactly 0).
        col = k * tk + lax.broadcasted_iota(jnp.int32, a.shape, 1)
        a = jnp.where(col < n_cols, a, 0)

    acc_ref[...] += jnp.dot(a, xw_ref[...], preferred_element_type=jnp.float32)

    @pl.when(k == pl.num_programs(1) - 1)
    def _():
        o_ref[...] = jnp.maximum(acc_ref[...], 0.0).astype(o_ref.dtype)


def _choose_tiles(n, d_out_p, s_bytes, budget):
    """Pick (tm, tk) for stage 2.  Prefers resident xw (tk == n); counts
    double-buffering of every input/output block."""
    # --- Resident-xw path: largest MXU-aligned row tile that fits. ---
    xw_resident = 2 * n * d_out_p * s_bytes            # 2 buffers even w/ const index
    for tm in (1024, 512, 256, 128):
        t = min(tm, n)
        use = (xw_resident
               + 2 * t * n * s_bytes                   # adj row tile (double-buffered)
               + 2 * t * d_out_p * 4                   # f32 output tile
               + t * d_out_p * 4)                      # f32 accumulator scratch
        if use <= budget:
            return t, n
    # --- Fallback: stream xw in K chunks (large graphs). ---
    for tm in (512, 256, 128):
        t = min(tm, n)
        tk = _round_up(n, 128)
        while True:
            use = (2 * t * tk * s_bytes                # adj tile
                   + 2 * tk * d_out_p * s_bytes        # xw chunk
                   + 2 * t * d_out_p * 4               # output tile
                   + t * d_out_p * 4)                  # accumulator
            if use <= budget or tk <= 128:
                break
            tk = max(128, _round_up(tk // 2, 128))
        if use <= budget:
            return t, tk
    return min(128, n), 128


@functools.partial(jax.jit, static_argnames=("block_rows", "block_cols", "stream_dtype"))
def graph_conv_sparse(adj, inputs, weight, *, block_rows=None, block_cols=None,
                      stream_dtype=jnp.bfloat16):
    """relu(adj @ (inputs @ weight)) with Pallas TPU kernels.

    stream_dtype: dtype used for the O(N^2) adj stream and the xw operand
    (f32 MXU accumulation).  bf16 ~halves HBM traffic; use jnp.float32 for
    exact torch.mm numerics.
    """
    N, D_in = inputs.shape
    D_in2, D_out = weight.shape
    assert adj.shape == (N, N) and D_in == D_in2, (adj.shape, inputs.shape, weight.shape)

    cap = _vmem_capacity_bytes()
    budget = int(cap * 0.70)
    vmem_limit = min(int(cap * 0.90), 128 << 20)

    s_bytes = jnp.dtype(stream_dtype).itemsize
    d_out_p = _round_up(D_out, 128)                    # lane-dense output columns

    adj_s = adj.astype(stream_dtype)
    inputs_f = inputs.astype(jnp.float32)
    weight_f = weight.astype(jnp.float32)
    if d_out_p != D_out:
        weight_f = jnp.pad(weight_f, ((0, 0), (0, d_out_p - D_out)))

    # ---------------- Stage 1: xw = inputs @ weight ----------------
    tmx = 256 if N >= 256 else N
    xw = pl.pallas_call(
        _xw_kernel,
        out_shape=jax.ShapeDtypeStruct((N, d_out_p), stream_dtype),
        grid_spec=pltpu.PrefetchScalarGridSpec(
            num_scalar_prefetch=0,
            grid=(pl.cdiv(N, tmx),),
            in_specs=[
                pl.BlockSpec((tmx, D_in), lambda i: (i, 0)),        # inputs row tile
                pl.BlockSpec((D_in, d_out_p), lambda i: (0, 0)),    # weight resident
            ],
            out_specs=pl.BlockSpec((tmx, d_out_p), lambda i: (i, 0)),
        ),
        compiler_params=pltpu.CompilerParams(
            dimension_semantics=("parallel",),
            vmem_limit_bytes=vmem_limit,
        ),
    )(inputs_f, weight_f)

    # ---------------- Stage 2: relu(adj @ xw) ----------------
    tm_auto, tk_auto = _choose_tiles(N, d_out_p, s_bytes, budget)
    tm = tm_auto if block_rows is None else min(_round_up(block_rows, 8), N)
    if block_cols is None:
        tk = tk_auto
    else:
        tk = N if _round_up(block_cols, 128) >= N else _round_up(block_cols, 128)

    n_k = _round_up(N, tk)
    if n_k != N:
        # Zero-pad only xw rows (O(N*Dout), negligible) so K-padding terms are exact 0.
        xw = jnp.pad(xw, ((0, n_k - N), (0, 0)))
    mask_k = (N % tk) != 0

    kernel = functools.partial(_gcn_kernel, n_cols=N, tk=tk, mask_k=mask_k)
    out = pl.pallas_call(
        kernel,
        out_shape=jax.ShapeDtypeStruct((N, d_out_p), jnp.float32),
        grid_spec=pltpu.PrefetchScalarGridSpec(
            num_scalar_prefetch=0,
            grid=(pl.cdiv(N, tm), n_k // tk),
            in_specs=[
                pl.BlockSpec((tm, tk), lambda i, k: (i, k)),        # adj streamed once
                pl.BlockSpec((tk, d_out_p), lambda i, k: (k, 0)),   # xw resident / K-chunk
            ],
            out_specs=pl.BlockSpec((tm, d_out_p), lambda i, k: (i, 0)),
            scratch_shapes=[pltpu.VMEM((tm, d_out_p), jnp.float32)],
        ),
        compiler_params=pltpu.CompilerParams(
            # Row axis independent across tiles -> megacore-shardable (2x on v7x);
            # K axis carries the accumulator -> arbitrary.
            dimension_semantics=("parallel", "arbitrary"),
            vmem_limit_bytes=vmem_limit,
        ),
    )(adj_s, xw)

    return out if d_out_p == D_out else out[:, :D_out]


def glorot_init(key, input_dim, output_dim):
    init_range = jnp.sqrt(6.0 / (input_dim + output_dim))
    return jax.random.uniform(
        key, (input_dim, output_dim), jnp.float32,
        minval=-init_range, maxval=init_range,
    )


if __name__ == "__main__":
    # Small shapes consistent with the module's forward (dense stand-in for the
    # normalized adjacency; torch.mm semantics are identical).
    # TODO(synk): a torch.sparse adjacency has no native sparse-matmul path here;
    # it is treated as a dense [N, N] operand.
    N, D_IN, D_OUT = 600, 64, 32

    key = jax.random.PRNGKey(0)
    k_adj, k_x, k_w = jax.random.split(key, 3)
    adj = jax.random.uniform(k_adj, (N, N), jnp.float32)
    inputs = jax.random.normal(k_x, (N, D_IN), jnp.float32)
    weight = glorot_init(k_w, D_IN, D_OUT)

    ref = jnp.maximum(adj @ (inputs @ weight), 0.0)

    # Auto-tiled path (xw fully resident, single K step).
    out = jax.block_until_ready(graph_conv_sparse(adj, inputs, weight))
    # Forced small tiles: exercises K-axis streaming, partial edge tiles, column mask.
    out_kt = jax.block_until_ready(
        graph_conv_sparse(adj, inputs, weight, block_rows=256, block_cols=256))

    scale = float(jnp.max(jnp.abs(ref))) + 1e-6
    for o in (out, out_kt):
        assert o.shape == (N, D_OUT), o.shape
        rel_err = float(jnp.max(jnp.abs(o - ref))) / scale
        assert rel_err < 2e-2, rel_err   # bf16-streamed adj/xw vs f32 reference
    print("KERNEL_OK")
</pallas_src>

<mosaic_0001>
module attributes {stable_mosaic.version = 11 : i64} {
  func.func @_xw_kernel(%arg0: i32, %arg1: memref<256x64xf32, #tpu.memory_space<vmem>>, %arg2: memref<64x128xf32, #tpu.memory_space<vmem>>, %arg3: memref<256x128xbf16, #tpu.memory_space<vmem>>) attributes {dimension_semantics = [#tpu.dimension_semantics<parallel>], iteration_bounds = array<i64: 3>, scalar_prefetch = 0 : i64, scratch_operands = 0 : i64, tpu.core_type = #tpu.core_type<tc>, window_params = [{transform_indices = @transform_0, window_bounds = array<i64: 256, 64>}, {pipeline_mode = #tpu.pipeline_mode<synchronous>, transform_indices = @transform_1, window_bounds = array<i64: 64, 128>}, {transform_indices = @transform_2, window_bounds = array<i64: 256, 128>}]} {
    %c0 = arith.constant 0 : index
    %c0_0 = arith.constant 0 : index
    %0 = vector.load %arg1[%c0, %c0_0] : memref<256x64xf32, #tpu.memory_space<vmem>>, vector<256x64xf32>
    %c0_1 = arith.constant 0 : index
    %c0_2 = arith.constant 0 : index
    %1 = vector.load %arg2[%c0_1, %c0_2] : memref<64x128xf32, #tpu.memory_space<vmem>>, vector<64x128xf32>
    %cst = arith.constant dense<0.000000e+00> : vector<256x128xf32>
    %2 = tpu.matmul %0, %1, %cst {dimension_numbers = #tpu.dot_dimension_numbers<[1], [0], [0], [1], [0, 0, 1, 1], [], []>} : vector<256x64xf32>, vector<64x128xf32>, vector<256x128xf32> -> vector<256x128xf32>
    %3 = arith.truncf %2 : vector<256x128xf32> to vector<256x128xbf16>
    %c0_3 = arith.constant 0 : index
    %c0_4 = arith.constant 0 : index
    %4 = vector.load %arg3[%c0_3, %c0_4] : memref<256x128xbf16, #tpu.memory_space<vmem>>, vector<256x128xbf16>
    tpu.vector_store %arg3[%c0_3, %c0_4], %3 {strides = array<i32>} : memref<256x128xbf16, #tpu.memory_space<vmem>>, vector<256x128xbf16>,
    return
  }
  func.func @transform_0(%arg0: i32) -> (i32, i32) {
    %c0_i32 = arith.constant 0 : i32
    %c0_i32_0 = arith.constant 0 : i32
    return %arg0, %c0_i32 : i32, i32
  }
  func.func @transform_1(%arg0: i32) -> (i32, i32) {
    %c0_i32 = arith.constant 0 : i32
    %c0_i32_0 = arith.constant 0 : i32
    %c0_i32_1 = arith.constant 0 : i32
    return %c0_i32, %c0_i32_0 : i32, i32
  }
  func.func @transform_2(%arg0: i32) -> (i32, i32) {
    %c0_i32 = arith.constant 0 : i32
    %c0_i32_0 = arith.constant 0 : i32
    return %arg0, %c0_i32 : i32, i32
  }
}

module attributes {stable_mosaic.version = 11 : i64} {
  func.func @_gcn_kernel(%arg0: i32, %arg1: i32, %arg2: memref<600x600xbf16, #tpu.memory_space<vmem>>, %arg3: memref<600x128xbf16, #tpu.memory_space<vmem>>, %arg4: memref<600x128xf32, #tpu.memory_space<vmem>>, %arg5: memref<600x128xf32, #tpu.memory_space<vmem>>) attributes {dimension_semantics = [#tpu.dimension_semantics<parallel>, #tpu.dimension_semantics<arbitrary>], iteration_bounds = array<i64: 1, 1>, scalar_prefetch = 0 : i64, scratch_operands = 1 : i64, tpu.core_type = #tpu.core_type<tc>, window_params = [{transform_indices = @transform_0, window_bounds = array<i64: 600, 600>}, {transform_indices = @transform_1, window_bounds = array<i64: 600, 128>}, {transform_indices = @transform_2, window_bounds = array<i64: 600, 128>}]} {
    %c0_i32 = arith.constant 0 : i32
    %0 = arith.cmpi eq, %arg1, %c0_i32 : i32
    %1 = arith.extui %0 : i1 to i32
    %c0_i32_0 = arith.constant 0 : i32
    %2 = arith.cmpi ne, %1, %c0_i32_0 : i32
    scf.if %2 {
      %cst_10 = arith.constant 0.000000e+00 : f32
      %12 = vector.broadcast %cst_10 : f32 to vector<600x128xf32>
      %c0_11 = arith.constant 0 : index
      %c0_12 = arith.constant 0 : index
      %13 = vector.load %arg5[%c0_11, %c0_12] : memref<600x128xf32, #tpu.memory_space<vmem>>, vector<600x128xf32>
      tpu.vector_store %arg5[%c0_11, %c0_12], %12 {strides = array<i32>} : memref<600x128xf32, #tpu.memory_space<vmem>>, vector<600x128xf32>,
    } else {
    }
    %c0 = arith.constant 0 : index
    %c0_1 = arith.constant 0 : index
    %3 = vector.load %arg2[%c0, %c0_1] : memref<600x600xbf16, #tpu.memory_space<vmem>>, vector<600x600xbf16>
    %c0_2 = arith.constant 0 : index
    %c0_3 = arith.constant 0 : index
    %4 = vector.load %arg5[%c0_2, %c0_3] : memref<600x128xf32, #tpu.memory_space<vmem>>, vector<600x128xf32>
    %c0_4 = arith.constant 0 : index
    %c0_5 = arith.constant 0 : index
    %5 = vector.load %arg3[%c0_4, %c0_5] : memref<600x128xbf16, #tpu.memory_space<vmem>>, vector<600x128xbf16>
    %cst = arith.constant dense<0.000000e+00> : vector<600x128xf32>
    %6 = tpu.matmul %3, %5, %cst {dimension_numbers = #tpu.dot_dimension_numbers<[1], [0], [0], [1], [0, 0, 1, 1], [], []>} : vector<600x600xbf16>, vector<600x128xbf16>, vector<600x128xf32> -> vector<600x128xf32>
    %7 = arith.addf %4, %6 : vector<600x128xf32>
    %c0_6 = arith.constant 0 : index
    %c0_7 = arith.constant 0 : index
    %8 = vector.load %arg5[%c0_6, %c0_7] : memref<600x128xf32, #tpu.memory_space<vmem>>, vector<600x128xf32>
    tpu.vector_store %arg5[%c0_6, %c0_7], %7 {strides = array<i32>} : memref<600x128xf32, #tpu.memory_space<vmem>>, vector<600x128xf32>,
    %c0_i32_8 = arith.constant 0 : i32
    %9 = arith.cmpi eq, %arg1, %c0_i32_8 : i32
    %10 = arith.extui %9 : i1 to i32
    %c0_i32_9 = arith.constant 0 : i32
    %11 = arith.cmpi ne, %10, %c0_i32_9 : i32
    scf.if %11 {
      %c0_10 = arith.constant 0 : index
      %c0_11 = arith.constant 0 : index
      %12 = vector.load %arg5[%c0_10, %c0_11] : memref<600x128xf32, #tpu.memory_space<vmem>>, vector<600x128xf32>
      %cst_12 = arith.constant 0.000000e+00 : f32
      %13 = vector.broadcast %cst_12 : f32 to vector<600x128xf32>
      %14 = arith.maximumf %12, %13 : vector<600x128xf32>
      %c0_13 = arith.constant 0 : index
      %c0_14 = arith.constant 0 : index
      %15 = vector.load %arg4[%c0_13, %c0_14] : memref<600x128xf32, #tpu.memory_space<vmem>>, vector<600x128xf32>
      tpu.vector_store %arg4[%c0_13, %c0_14], %14 {strides = array<i32>} : memref<600x128xf32, #tpu.memory_space<vmem>>, vector<600x128xf32>,
    } else {
    }
    return
  }
  func.func @transform_0(%arg0: i32, %arg1: i32) -> (i32, i32) {
    %c0_i32 = arith.constant 0 : i32
    return %arg0, %arg1 : i32, i32
  }
  func.func @transform_1(%arg0: i32, %arg1: i32) -> (i32, i32) {
    %c0_i32 = arith.constant 0 : i32
    %c0_i32_0 = arith.constant 0 : i32
    return %arg1, %c0_i32 : i32, i32
  }
  func.func @transform_2(%arg0: i32, %arg1: i32) -> (i32, i32) {
    %c0_i32 = arith.constant 0 : i32
    %c0_i32_0 = arith.constant 0 : i32
    return %arg0, %c0_i32 : i32, i32
  }
}

</mosaic_0001>

<bundles_post_ra>
// kernel: graph_conv_sparse.2
= control target key start
LH: loop header
LB: loop body
LE: loop exit
PB: predicated region body
PF: predicated region fallthrough
CT: control target
= control target key end

     0   :  { %s1562_s9 = smov 0   ;;  %s1564_s10 = smov 0   ;;  %s1843_s0 = inlined_call_operand.vmem [shape: f32[600,64], index: 0, kind: input, shape index: {}]   ;;  %s1844_s1 = inlined_call_operand.vmem [shape: f32[64,128], index: 1, kind: input, shape index: {}]   ;;  %s1845_s2 = inlined_call_operand.vmem [shape: bf16[600,128], index: 2, kind: output, shape index: {}]  }
   0x1   :  { %s1566_s11 = smov 0  }
   0x2 LB: > { %s1575_s12 = sadd.s32 4294967295, %s1513_s11   ;;  %s1577_s13 = sadd.s32 1, %s1513_s11   ;;  %s1513_s11 = sphi %s1566_s11, %s1852_s11   ;;  %s1509_s10 = sphi %s1564_s10, %s1851_s10   ;;  %s1505_s9 = sphi %s1562_s9, %s1850_s9  }
   0x3   : > { %s63_s14 = ssub.s32 %s1513_s11, %s1577_s13  ;;  %s66_s15 = sadd.s32 1, %s1509_s10 }
   0x4   : > { %p64_p0 = scmp.eq.s32.totalorder %s63_s14, 0  ;;  %p76_p1 = scmp.ne.s32.totalorder %s1509_s10, %s1505_s9 }
   0x5   : > { %p77_p2 = scmp.eq.s32.totalorder %s1575_s12, 2  ;;  %p1028_p3 = scmp.ge.s32.totalorder %s1513_s11, 1 }
   0x6   : > { %s1585_s16 = scalar_select %p64_p0, %s1509_s10, %s66_s15  }
   0x7   : > { %p1587_p4 = por %p77_p2, %p76_p1  ;;  %p121_p5 = scmp.lt.s32.totalorder %s1513_s11, 4 }
   0x9   : > { %p122_p6 = pnand %p1028_p3, %p121_p5 }
   0xa   : > { %v197_v0 = vld [vmem:[%s1844_s1] sm:$0xff] (!%p122_p6)  ;;  %v198_v1 = vld [vmem:[%s1844_s1 + $0x8] sm:$0xff] (!%p122_p6)  ;;  %v199_v2 = vld [vmem:[%s1844_s1 + $0x10] sm:$0xff] (!%p122_p6)  ;;  %s1601_s24 = sshll.u32 (!%p122_p6), %s1575_s12, 5  ;;  %vm205_vm0 = vcmask (!%p122_p6), 523264   ;;  %s143_s18 = sand.u32 (!%p122_p6), 1, %s1505_s9  }
   0xb   : > { %125 = sbr.rel (%p122_p6) target bundleno = 343 (0x157), region = 28  ;;  %v1347_v3 = vpack.c.bf16 (!%p122_p6), %v198_v1, %v197_v0  ;;  %v200_v4 = vld [vmem:[%s1844_s1 + $0x18] sm:$0xff] (!%p122_p6)  ;;  %p151_p7 = scmp.lt.s32.totalorder (!%p122_p6), %s1601_s24, 74  ;;  %v201_v6 = vld [vmem:[%s1844_s1 + $0x20] sm:$0xff] (!%p122_p6)  ;;  %v202_v7 = vld [vmem:[%s1844_s1 + $0x28] sm:$0xff] (!%p122_p6) }
   0xc   : > { %v1351_v5 = vpack.c.bf16 (!%p122_p6), %v200_v4, %v199_v2  ;;  %v1355_v8 = vpack.c.bf16 (!%p122_p6), %v202_v7, %v201_v6  ;;  %v203_v9 = vld [vmem:[%s1844_s1 + $0x30] sm:$0xff] (!%p122_p6)  ;;  %v204_v10 = vld [vmem:[%s1844_s1 + $0x38] sm:$0xff] (!%p122_p6)  ;;  %s1029_s19 = sshll.u32 (!%p122_p6), %s143_s18, 7 }
   0xd   : > { %1348 = vmatprep.subr.bf16.mxu0 (!%p122_p6), %v1347_v3  ;;  %1363 = vmatprep.subr.bf16.mxu1 (!%p122_p6), %v1347_v3  ;;  %v1359_v13 = vpack.c.bf16 (!%p122_p6), %v204_v10, %v203_v9  ;;  %s1690_s20 = scalar_lea.vmem (!%p122_p6), [#allocation2], %s1029_s19  }
   0xe   : > { %1350 = vmatpush3.bf16.msra.mxu0 (!%p122_p6), %v1347_v3  ;;  %1367 = vmatpush3.bf16.msra.mxu1 (!%p122_p6), %v1347_v3 }
   0xf   : > { %1352 = vmatprep.subr.bf16.mxu0 (!%p122_p6), %v1351_v5  ;;  %1364 = vmatprep.subr.bf16.mxu1 (!%p122_p6), %v1351_v5 }
  0x12   : > { %s152_s3 = scalar_select %p151_p7, %s1601_s24, 74  ;;  %1354 = vmatpush3.bf16.msra.mxu0 %v1351_v5  ;;  %1368 = vmatpush3.bf16.msra.mxu1 %v1351_v5 }
  0x13   : > { %1356 = vmatprep.subr.bf16.mxu0 %v1355_v8  ;;  %1365 = vmatprep.subr.bf16.mxu1 %v1355_v8  ;;  %s695_s9 = ssub.s32 (%p1587_p4), 75, %s1601_s24  ;;  %s1145_s21 = sshll.u32 (%p1587_p4), %s1575_s12, 7 }
  0x14   : > { %s1031_s4 = sshll.u32 %s152_s3, 3  ;;  %p696_p8 = scmp.lt.s32.totalorder (%p1587_p4), %s695_s9, 32 }
  0x15   : > { %s1623_s15 = scalar_lea.vmem %s1843_s0, %s1031_s4  ;;  %s1715_s25 = scalar_lea.vmem (%p1587_p4), %s1845_s2, %s1145_s21  }
  0x16   : > { %v165_v11 = vld [vmem:[%s1623_s15] sm:$0xff]  ;;  %1358 = vmatpush3.bf16.msra.mxu0 %v1355_v8  ;;  %1369 = vmatpush3.bf16.msra.mxu1 %v1355_v8  ;;  %v166_v14 = vld [vmem:[%s1623_s15 + $0x8] sm:$0xff]  ;;  %v167_v16 = vld [vmem:[%s1623_s15 + $0x10] sm:$0xff] }
  0x17   : > { %v181_v12 = vld [vmem:[%s1623_s15 + $0x80] sm:$0xff]  ;;  %1299 = vmatprep.mubr.msk.f32.mxu0 %vm205_vm0, %v165_v11  ;;  %1360 = vmatprep.subr.bf16.mxu0 %v1359_v13  ;;  %v182_v15 = vld [vmem:[%s1623_s15 + $0x88] sm:$0xff]  ;;  %v183_v17 = vld [vmem:[%s1623_s15 + $0x90] sm:$0xff] }
  0x18   : > { %1323 = vmatprep.mubr.msk.f32.mxu1 %vm205_vm0, %v181_v12  ;;  %1366 = vmatprep.subr.bf16.mxu1 %v1359_v13  ;;  %v168_v18 = vld [vmem:[%s1623_s15 + $0x18] sm:$0xff]  ;;  %v169_v20 = vld [vmem:[%s1623_s15 + $0x20] sm:$0xff]  ;;  %v170_v22 = vld [vmem:[%s1623_s15 + $0x28] sm:$0xff] }
  0x19   : > { %v184_v19 = vld [vmem:[%s1623_s15 + $0x98] sm:$0xff]  ;;  %v185_v21 = vld [vmem:[%s1623_s15 + $0xa0] sm:$0xff]  ;;  %v186_v23 = vld [vmem:[%s1623_s15 + $0xa8] sm:$0xff] }
  0x1a   : > { %1362 = vmatpush3.bf16.msra.mxu0 %v1359_v13  ;;  %1370 = vmatpush3.bf16.msra.mxu1 %v1359_v13  ;;  %v171_v24 = vld [vmem:[%s1623_s15 + $0x30] sm:$0xff]  ;;  %v172_v26 = vld [vmem:[%s1623_s15 + $0x38] sm:$0xff]  ;;  %v173_v28 = vld [vmem:[%s1623_s15 + $0x40] sm:$0xff] }
  0x1b   : > { %v187_v25 = vld [vmem:[%s1623_s15 + $0xb0] sm:$0xff]  ;;  %v188_v27 = vld [vmem:[%s1623_s15 + $0xb8] sm:$0xff]  ;;  %v189_v29 = vld [vmem:[%s1623_s15 + $0xc0] sm:$0xff] }
  0x1c   : > { %v174_v30 = vld [vmem:[%s1623_s15 + $0x48] sm:$0xff]  ;;  %v175_v32 = vld [vmem:[%s1623_s15 + $0x50] sm:$0xff]  ;;  %v176_v34 = vld [vmem:[%s1623_s15 + $0x58] sm:$0xff] }
  0x1d   : > { %1300 = vmatmul.mubr.msk.f32.vlgmr.msra.gmra.mrb[0].mxu0 %vm205_vm0, %v166_v14  ;;  %1324 = vmatmul.mubr.msk.f32.vlgmr.msra.gmra.mrb[0].mxu1 %vm205_vm0, %v182_v15  ;;  %v190_v31 = vld [vmem:[%s1623_s15 + $0xc8] sm:$0xff]  ;;  %v191_v33 = vld [vmem:[%s1623_s15 + $0xd0] sm:$0xff]  ;;  %v192_v35 = vld [vmem:[%s1623_s15 + $0xd8] sm:$0xff] }
  0x1e   : > { %1302 = vmatprep.mubr.msk.f32.mxu0 %vm205_vm0, %v167_v16  ;;  %1326 = vmatprep.mubr.msk.f32.mxu1 %vm205_vm0, %v183_v17  ;;  %v177_v36 = vld [vmem:[%s1623_s15 + $0x60] sm:$0xff]  ;;  %v178_v38 = vld [vmem:[%s1623_s15 + $0x68] sm:$0xff]  ;;  %v179_v40 = vld [vmem:[%s1623_s15 + $0x70] sm:$0xff] }
  0x1f   : > { %v193_v37 = vld [vmem:[%s1623_s15 + $0xe0] sm:$0xff]  ;;  %v194_v39 = vld [vmem:[%s1623_s15 + $0xe8] sm:$0xff]  ;;  %v195_v41 = vld [vmem:[%s1623_s15 + $0xf0] sm:$0xff] }
  0x20   : > { %v180_v42 = vld [vmem:[%s1623_s15 + $0x78] sm:$0xff] }
  0x21   : > { %1303 = vmatmul.mubr.msk.f32.gmra.mrb[2].mxu0 %vm205_vm0, %v168_v18  ;;  %1327 = vmatmul.mubr.msk.f32.gmra.mrb[2].mxu1 %vm205_vm0, %v184_v19  ;;  %v196_v43 = vld [vmem:[%s1623_s15 + $0xf8] sm:$0xff] }
  0x22   : > { %1305 = vmatprep.mubr.msk.f32.mxu0 %vm205_vm0, %v169_v20  ;;  %1329 = vmatprep.mubr.msk.f32.mxu1 %vm205_vm0, %v185_v21 }
  0x25   : > { %1306 = vmatmul.mubr.msk.f32.gmra.mrb[4].mxu0 %vm205_vm0, %v170_v22  ;;  %1330 = vmatmul.mubr.msk.f32.gmra.mrb[4].mxu1 %vm205_vm0, %v186_v23 }
  0x26   : > { %1308 = vmatprep.mubr.msk.f32.mxu0 %vm205_vm0, %v171_v24  ;;  %1332 = vmatprep.mubr.msk.f32.mxu1 %vm205_vm0, %v187_v25 }
  0x29   : > { %1309 = vmatmul.mubr.msk.f32.gmra.mrb[6].mxu0 %vm205_vm0, %v172_v26  ;;  %1333 = vmatmul.mubr.msk.f32.gmra.mrb[6].mxu1 %vm205_vm0, %v188_v27 }
  0x2a   : > { %1311 = vmatprep.mubr.msk.f32.mxu0 %vm205_vm0, %v173_v28  ;;  %1335 = vmatprep.mubr.msk.f32.mxu1 %vm205_vm0, %v189_v29 }
  0x2d   : > { %1312 = vmatmul.mubr.msk.f32.gmra.mrb[8].mxu0 %vm205_vm0, %v174_v30  ;;  %1336 = vmatmul.mubr.msk.f32.gmra.mrb[8].mxu1 %vm205_vm0, %v190_v31 }
  0x2e   : > { %1314 = vmatprep.mubr.msk.f32.mxu0 %vm205_vm0, %v175_v32  ;;  %1338 = vmatprep.mubr.msk.f32.mxu1 %vm205_vm0, %v191_v33 }
  0x31   : > { %1315 = vmatmul.mubr.msk.f32.gmra.mrb[10].mxu0 %vm205_vm0, %v176_v34  ;;  %1339 = vmatmul.mubr.msk.f32.gmra.mrb[10].mxu1 %vm205_vm0, %v192_v35 }
  0x32   : > { %1317 = vmatprep.mubr.msk.f32.mxu0 %vm205_vm0, %v177_v36  ;;  %1341 = vmatprep.mubr.msk.f32.mxu1 %vm205_vm0, %v193_v37 }
  0x35   : > { %1318 = vmatmul.mubr.msk.f32.gmra.mrb[12].mxu0 %vm205_vm0, %v178_v38  ;;  %1342 = vmatmul.mubr.msk.f32.gmra.mrb[12].mxu1 %vm205_vm0, %v194_v39 }
  0x36   : > { %1320 = vmatprep.mubr.msk.f32.mxu0 %vm205_vm0, %v179_v40  ;;  %1344 = vmatprep.mubr.msk.f32.mxu1 %vm205_vm0, %v195_v41 }
  0x39   : > { %1321 = vmatmul.mubr.msk.f32.gmra.mrb[14].mxu0 %vm205_vm0, %v180_v42  ;;  %1345 = vmatmul.mubr.msk.f32.gmra.mrb[14].mxu1 %vm205_vm0, %v196_v43 }
  0xf0   : > { %v1301_v44 = vpop.f32.mrb[0].mxu0  ;;  %v1325_v45 = vpop.f32.mrb[0].mxu1 }
  0xf1   : > { %v368_v46 = vpop.f32.mrb[1].mxu0  ;;  %v448_v47 = vpop.f32.mrb[1].mxu1 }
  0xf2   : > { %v1151_v48 = vpack.c.bf16 %v1301_v44, %v368_v46  ;;  %v1191_v49 = vpack.c.bf16 %v1325_v45, %v448_v47 }
  0xf4   : > { %1152 = vst [vmem:[%s1690_s20] sm:$0xff] %v1151_v48   ;;  %1235 = vst [vmem:[%s1690_s20 + $0x40] sm:$0xff] %v1191_v49   ;;  %v1304_v50 = vpop.f32.mrb[2].mxu0  ;;  %v1328_v51 = vpop.f32.mrb[2].mxu1 }
  0xf5   : > { %v378_v52 = vpop.f32.mrb[3].mxu0  ;;  %v458_v53 = vpop.f32.mrb[3].mxu1 }
  0xf6   : > { %v1156_v54 = vpack.c.bf16 %v1304_v50, %v378_v52  ;;  %v1196_v55 = vpack.c.bf16 %v1328_v51, %v458_v53 }
  0xf8   : > { %1228 = vst [vmem:[%s1690_s20 + $0x8] sm:$0xff] %v1156_v54   ;;  %1236 = vst [vmem:[%s1690_s20 + $0x48] sm:$0xff] %v1196_v55   ;;  %v1307_v56 = vpop.f32.mrb[4].mxu0  ;;  %v1331_v57 = vpop.f32.mrb[4].mxu1 }
  0xf9   : > { %v388_v58 = vpop.f32.mrb[5].mxu0  ;;  %v468_v59 = vpop.f32.mrb[5].mxu1 }
  0xfa   : > { %v1161_v60 = vpack.c.bf16 %v1307_v56, %v388_v58  ;;  %v1201_v61 = vpack.c.bf16 %v1331_v57, %v468_v59 }
  0xfc   : > { %1229 = vst [vmem:[%s1690_s20 + $0x10] sm:$0xff] %v1161_v60   ;;  %1237 = vst [vmem:[%s1690_s20 + $0x50] sm:$0xff] %v1201_v61   ;;  %v1310_v62 = vpop.f32.mrb[6].mxu0  ;;  %v1334_v63 = vpop.f32.mrb[6].mxu1 }
  0xfd   : > { %v398_v0 = vpop.f32.mrb[7].mxu0  ;;  %v478_v1 = vpop.f32.mrb[7].mxu1 }
  0xfe   : > { %v1166_v2 = vpack.c.bf16 %v1310_v62, %v398_v0  ;;  %v1206_v3 = vpack.c.bf16 %v1334_v63, %v478_v1 }
 0x100   : > { %1230 = vst [vmem:[%s1690_s20 + $0x18] sm:$0xff] %v1166_v2   ;;  %1238 = vst [vmem:[%s1690_s20 + $0x58] sm:$0xff] %v1206_v3   ;;  %v1313_v4 = vpop.f32.mrb[8].mxu0  ;;  %v1337_v5 = vpop.f32.mrb[8].mxu1 }
 0x101   : > { %v408_v6 = vpop.f32.mrb[9].mxu0  ;;  %v488_v7 = vpop.f32.mrb[9].mxu1 }
 0x102   : > { %v1171_v8 = vpack.c.bf16 %v1313_v4, %v408_v6  ;;  %v1211_v9 = vpack.c.bf16 %v1337_v5, %v488_v7 }
 0x104   : > { %1231 = vst [vmem:[%s1690_s20 + $0x20] sm:$0xff] %v1171_v8   ;;  %1239 = vst [vmem:[%s1690_s20 + $0x60] sm:$0xff] %v1211_v9   ;;  %v1316_v10 = vpop.f32.mrb[10].mxu0  ;;  %v1340_v11 = vpop.f32.mrb[10].mxu1 }
 0x105   : > { %v418_v12 = vpop.f32.mrb[11].mxu0  ;;  %v498_v13 = vpop.f32.mrb[11].mxu1 }
 0x106   : > { %v1176_v14 = vpack.c.bf16 %v1316_v10, %v418_v12  ;;  %v1216_v15 = vpack.c.bf16 %v1340_v11, %v498_v13 }
 0x108   : > { %1232 = vst [vmem:[%s1690_s20 + $0x28] sm:$0xff] %v1176_v14   ;;  %1240 = vst [vmem:[%s1690_s20 + $0x68] sm:$0xff] %v1216_v15   ;;  %v1319_v16 = vpop.f32.mrb[12].mxu0  ;;  %v1343_v17 = vpop.f32.mrb[12].mxu1 }
 0x109   : > { %v428_v18 = vpop.f32.mrb[13].mxu0  ;;  %v508_v19 = vpop.f32.mrb[13].mxu1 }
 0x10a   : > { %v1181_v20 = vpack.c.bf16 %v1319_v16, %v428_v18  ;;  %v1221_v21 = vpack.c.bf16 %v1343_v17, %v508_v19  ;;  %693 = sbr.rel (!%p1587_p4) target bundleno = 343 (0x157), region = 32 }
 0x10c   : > { %1233 = vst [vmem:[%s1690_s20 + $0x30] sm:$0xff] %v1181_v20   ;;  %1241 = vst [vmem:[%s1690_s20 + $0x70] sm:$0xff] %v1221_v21   ;;  %v1322_v22 = vpop.f32.mrb[14].mxu0  ;;  %v1346_v23 = vpop.f32.mrb[14].mxu1 }
 0x10d   : > { %v438_v24 = vpop.f32.mrb[15].mxu0  ;;  %v518_v25 = vpop.f32.mrb[15].mxu1 }
 0x10e   : > { %v1186_v26 = vpack.c.bf16 %v1322_v22, %v438_v24  ;;  %v1226_v27 = vpack.c.bf16 %v1346_v23, %v518_v25 }
 0x110   : > { %1234 = vst [vmem:[%s1690_s20 + $0x38] sm:$0xff] %v1186_v26   ;;  %1242 = vst [vmem:[%s1690_s20 + $0x78] sm:$0xff] %v1226_v27  }
 0x111   : > { %s1854_s9 = smov (!%p696_p8, %s695_s9), 32 }
 0x112   : > { %s1098_s26 = sshll.u32 %s1854_s9, 6 }
 0x113   : > { %p1101_p9 = scmp.eq.s32.totalorder %s1098_s26, 0 }
 0x114   : > { %s1721_s27 = sshrl.u32 (!%p1101_p9), %s1854_s9, 5 }
 0x115   : > { %704 = sbr.rel (%p1101_p9) target bundleno = 343 (0x157), region = 36  ;;  %p1102_p10 = scmp.le.s32.totalorder (!%p1101_p9), %s1721_s27, 0 }
 0x11c   : > { %981 = sbr.rel (%p1102_p10) target bundleno = 322 (0x142), region = 108  ;;  %s1847_s12 = smov (!%p1102_p10), %s1715_s25 }
 0x11d   : > { %s1848_s17 = smov (!%p1102_p10), %s1690_s20  ;;  %s1730_s24 = smov (!%p1102_p10), 0  }
 0x11e   : > { %s1732_s28 = smov (!%p1102_p10), 0  }
 0x123 LB: >> { %v720_v28 = vld [vmem:[%s1521_s17] sm:$0xf]  ;;  %v722_v29 = vld [vmem:[%s1521_s17 + $0x4] sm:$0xf]  ;;  %v724_v30 = vld [vmem:[%s1521_s17 + $0x8] sm:$0xf]  ;;  %s1529_s28 = sphi %s1732_s28, %s714_s28   ;;  %s1525_s24 = sphi %s1730_s24, %s1849_s24   ;;  %s1521_s17 = sphi %s1848_s17, %s789_s17   ;;  %s1517_s12 = sphi %s1847_s12, %s790_s12  }
 0x124   : >> { %721 = vst [vmem:[%s1517_s12] sm:$0xf] %v720_v28  ;;  %723 = vst [vmem:[%s1517_s12 + $0x4] sm:$0xf] %v722_v29  ;;  %v726_v31 = vld [vmem:[%s1521_s17 + $0xc] sm:$0xf]  ;;  %s784_s29 = sadd.s32 1, %s1525_s24 }
 0x125   : >> { %725 = vst [vmem:[%s1517_s12 + $0x8] sm:$0xf] %v724_v30  ;;  %v728_v32 = vld [vmem:[%s1521_s17 + $0x10] sm:$0xf]  ;;  %v730_v33 = vld [vmem:[%s1521_s17 + $0x14] sm:$0xf]  ;;  %p785_p11 = scmp.ge.s32.totalorder %s784_s29, %s1721_s27 }
 0x126   : >> { %727 = vst [vmem:[%s1517_s12 + $0xc] sm:$0xf] %v726_v31  ;;  %729 = vst [vmem:[%s1517_s12 + $0x10] sm:$0xf] %v728_v32  ;;  %v732_v34 = vld [vmem:[%s1521_s17 + $0x18] sm:$0xf] }
 0x127   : >> { %731 = vst [vmem:[%s1517_s12 + $0x14] sm:$0xf] %v730_v33  ;;  %v734_v35 = vld [vmem:[%s1521_s17 + $0x1c] sm:$0xf]  ;;  %v736_v36 = vld [vmem:[%s1521_s17 + $0x20] sm:$0xf] }
 0x128   : >> { %733 = vst [vmem:[%s1517_s12 + $0x18] sm:$0xf] %v732_v34  ;;  %735 = vst [vmem:[%s1517_s12 + $0x1c] sm:$0xf] %v734_v35  ;;  %v738_v37 = vld [vmem:[%s1521_s17 + $0x24] sm:$0xf] }
 0x129   : >> { %737 = vst [vmem:[%s1517_s12 + $0x20] sm:$0xf] %v736_v36  ;;  %v740_v38 = vld [vmem:[%s1521_s17 + $0x28] sm:$0xf]  ;;  %v742_v39 = vld [vmem:[%s1521_s17 + $0x2c] sm:$0xf] }
 0x12a   : >> { %739 = vst [vmem:[%s1517_s12 + $0x24] sm:$0xf] %v738_v37  ;;  %741 = vst [vmem:[%s1517_s12 + $0x28] sm:$0xf] %v740_v38  ;;  %v744_v40 = vld [vmem:[%s1521_s17 + $0x30] sm:$0xf] }
 0x12b   : >> { %743 = vst [vmem:[%s1517_s12 + $0x2c] sm:$0xf] %v742_v39  ;;  %v746_v41 = vld [vmem:[%s1521_s17 + $0x34] sm:$0xf]  ;;  %v748_v42 = vld [vmem:[%s1521_s17 + $0x38] sm:$0xf] }
 0x12c   : >> { %745 = vst [vmem:[%s1517_s12 + $0x30] sm:$0xf] %v744_v40  ;;  %747 = vst [vmem:[%s1517_s12 + $0x34] sm:$0xf] %v746_v41  ;;  %v750_v43 = vld [vmem:[%s1521_s17 + $0x3c] sm:$0xf] }
 0x12d   : >> { %749 = vst [vmem:[%s1517_s12 + $0x38] sm:$0xf] %v748_v42  ;;  %v752_v44 = vld [vmem:[%s1521_s17 + $0x40] sm:$0xf]  ;;  %v754_v45 = vld [vmem:[%s1521_s17 + $0x44] sm:$0xf] }
 0x12e   : >> { %751 = vst [vmem:[%s1517_s12 + $0x3c] sm:$0xf] %v750_v43  ;;  %753 = vst [vmem:[%s1517_s12 + $0x40] sm:$0xf] %v752_v44  ;;  %v756_v46 = vld [vmem:[%s1521_s17 + $0x48] sm:$0xf] }
 0x12f   : >> { %755 = vst [vmem:[%s1517_s12 + $0x44] sm:$0xf] %v754_v45  ;;  %v758_v47 = vld [vmem:[%s1521_s17 + $0x4c] sm:$0xf]  ;;  %v760_v48 = vld [vmem:[%s1521_s17 + $0x50] sm:$0xf] }
 0x130   : >> { %757 = vst [vmem:[%s1517_s12 + $0x48] sm:$0xf] %v756_v46  ;;  %759 = vst [vmem:[%s1517_s12 + $0x4c] sm:$0xf] %v758_v47  ;;  %v762_v49 = vld [vmem:[%s1521_s17 + $0x54] sm:$0xf] }
 0x131   : >> { %761 = vst [vmem:[%s1517_s12 + $0x50] sm:$0xf] %v760_v48  ;;  %v764_v50 = vld [vmem:[%s1521_s17 + $0x58] sm:$0xf]  ;;  %v766_v51 = vld [vmem:[%s1521_s17 + $0x5c] sm:$0xf] }
 0x132   : >> { %763 = vst [vmem:[%s1517_s12 + $0x54] sm:$0xf] %v762_v49  ;;  %765 = vst [vmem:[%s1517_s12 + $0x58] sm:$0xf] %v764_v50  ;;  %v768_v52 = vld [vmem:[%s1521_s17 + $0x60] sm:$0xf] }
 0x133   : >> { %767 = vst [vmem:[%s1517_s12 + $0x5c] sm:$0xf] %v766_v51  ;;  %v770_v53 = vld [vmem:[%s1521_s17 + $0x64] sm:$0xf]  ;;  %v772_v54 = vld [vmem:[%s1521_s17 + $0x68] sm:$0xf] }
 0x134   : >> { %769 = vst [vmem:[%s1517_s12 + $0x60] sm:$0xf] %v768_v52  ;;  %771 = vst [vmem:[%s1517_s12 + $0x64] sm:$0xf] %v770_v53  ;;  %v774_v55 = vld [vmem:[%s1521_s17 + $0x6c] sm:$0xf] }
 0x135   : >> { %773 = vst [vmem:[%s1517_s12 + $0x68] sm:$0xf] %v772_v54  ;;  %v776_v56 = vld [vmem:[%s1521_s17 + $0x70] sm:$0xf]  ;;  %v778_v57 = vld [vmem:[%s1521_s17 + $0x74] sm:$0xf] }
 0x136   : >> { %775 = vst [vmem:[%s1517_s12 + $0x6c] sm:$0xf] %v774_v55  ;;  %777 = vst [vmem:[%s1517_s12 + $0x70] sm:$0xf] %v776_v56  ;;  %v780_v58 = vld [vmem:[%s1521_s17 + $0x78] sm:$0xf] }
 0x137   : >> { %779 = vst [vmem:[%s1517_s12 + $0x74] sm:$0xf] %v778_v57  ;;  %v782_v59 = vld [vmem:[%s1521_s17 + $0x7c] sm:$0xf]  ;;  %781 = vst [vmem:[%s1517_s12 + $0x78] sm:$0xf] %v780_v58 }
 0x138   : >> { %783 = vst [vmem:[%s1517_s12 + $0x7c] sm:$0xf] %v782_v59  ;;  %s1856_s29 = smov (%p785_p11, %s784_s29), 0  ;;  %s714_s28 = sadd.s32 1, %s1529_s28  }
 0x139   : >> { %s1103_s30 = sshll.u32 %s1856_s29, 7  ;;  %p713_p12 = scmp.ge.s32.totalorder %s714_s28, %s1721_s27 }
 0x13a   : >> { %s789_s17 = scalar_lea.vmem %s1690_s20, %s1103_s30 [#allocation2]   ;;  %s790_s12 = scalar_lea.vmem %s1715_s25, %s1103_s30  }
 0x13b   : >> { %s1849_s24 = smov %s1856_s29  ;;  %716 = sbr.rel (!%p713_p12) target bundleno = 291 (0x123), region = 114 }
 0x142 PF: > { %s1825_s3 = sand.u32 31, %s1854_s9   ;;  %s1146_s4 = sshll.u32 %s1721_s27, 7 }
 0x143   : > { %s795_s5 = scalar_lea.vmem %s1690_s20, %s1146_s4 [#allocation2]   ;;  %s797_s6 = scalar_lea.vmem %s1715_s25, %s1146_s4  }
 0x144   : > { %p1108_p13 = scmp.le.s32.totalorder %s1825_s3, 0 }
 0x145   : > { %s1531_s7 = smov (!%p1108_p13), %s797_s6   ;;  %s1535_s8 = smov (!%p1108_p13), %s795_s5  }
 0x146   : > { %995 = sbr.rel (%p1108_p13) target bundleno = 343 (0x157), region = 119  ;;  %s1539_s11 = smov (!%p1108_p13), 0  }
 0x147   : > { %s1543_s14 = smov (!%p1108_p13), 0  }
 0x14d LB: >> { %v807_v60 = vld [vmem:[%s1537_s8] sm:$0xf]  ;;  %s809_s15 = sadd.s32 1, %s1541_s11  ;;  %s801_s14 = sadd.s32 1, %s1545_s14   ;;  %s1545_s14 = sphi %s1543_s14, %s801_s14   ;;  %s1541_s11 = sphi %s1539_s11, %s1540_s11   ;;  %s1537_s8 = sphi %s1535_s8, %s814_s8   ;;  %s1533_s7 = sphi %s1531_s7, %s815_s7  }
 0x14e   : >> { %808 = vst [vmem:[%s1533_s7] sm:$0xf] %v807_v60  ;;  %p810_p0 = scmp.ge.s32.totalorder %s809_s15, %s1825_s3  ;;  %p800_p1 = scmp.ge.s32.totalorder %s801_s14, %s1825_s3 }
 0x150   : >> { %s1858_s15 = smov (%p810_p0, %s809_s15), 0  ;;  %803 = sbr.rel (!%p800_p1) target bundleno = 333 (0x14d), region = 125 }
 0x151   : >> { %s1109_s18 = sshll.u32 %s1858_s15, 2  ;;  %s1540_s11 = smov %s1858_s15  }
 0x152   : >> { %s814_s8 = scalar_lea.vmem %s795_s5, %s1109_s18 [#allocation2]   ;;  %s815_s7 = scalar_lea.vmem %s797_s6, %s1109_s18  }
 0x157 PF: > { %p9_p2 = scmp.ge.s32.totalorder %s1577_s13, 5   ;;  %s1850_s9 = smov %s1509_s10 }
 0x158   : > { %s1851_s10 = smov %s1585_s16  ;;  %s1852_s11 = smov %s1577_s13 }
 0x159   :  { %11 = sbr.rel (!%p9_p2) target bundleno = 2 (0x2), region = 136 }

// kernel: graph_conv_sparse.3
= control target key start
LH: loop header
LB: loop body
LE: loop exit
PB: predicated region body
PF: predicated region fallthrough
CT: control target
= control target key end

     0   :  { %v3970_v0 = vmov 0   ;;  %vm1748_vm0 = vcmask 1043456   ;;  %vm1633_vm1 = vcmask 719872   ;;  %s5326_s1 = inlined_call_operand.vmem [shape: bf16[600,128], index: 1, kind: input, shape index: {}]   ;;  %s5327_s0 = inlined_call_operand.vmem [shape: bf16[600,600], index: 0, kind: input, shape index: {}]   ;;  %s5328_s2 = inlined_call_operand.vmem [shape: f32[600,128], index: 2, kind: output, shape index: {}]  }
   0x1   :  { %1752 = vmatprep.subr.bf16.mxu0 %v3970_v0  ;;  %3540 = vmatprep.subr.bf16.mxu1 %v3970_v0  ;;  %v3668_v1 = vld [vmem:[%s5326_s1] sm:$0xff]   ;;  %v3669_v2 = vld [vmem:[%s5326_s1 + $0x8] sm:$0xff]   ;;  %v3670_v3 = vld [vmem:[%s5326_s1 + $0x10] sm:$0xff]  }
   0x2   :  { %1753 = vmatpush1.bf16.msra.mxu0 %v3668_v1  ;;  %3556 = vmatpush1.bf16.msra.mxu1 %v3668_v1  ;;  %v3671_v4 = vld [vmem:[%s5326_s1 + $0x18] sm:$0xff]   ;;  %v3672_v5 = vld [vmem:[%s5326_s1 + $0x20] sm:$0xff]   ;;  %v3673_v7 = vld [vmem:[%s5326_s1 + $0x28] sm:$0xff]  }
   0x3   :  { %1754 = vmatprep.subr.bf16.mxu0 %v3970_v0  ;;  %3541 = vmatprep.subr.bf16.mxu1 %v3970_v0  ;;  %v3686_v6 = vld [vmem:[%s5327_s0 + $0x4] ss:$20 sps:$4 sm:$0xff]   ;;  %v3689_v8 = vld [vmem:[%s5327_s0 + $0x194] ss:$20 sps:$4 sm:$0xff]   ;;  %v3692_v23 = vld [vmem:[%s5327_s0 + $0x2c] ss:$20 sps:$4 sm:$0xff]  }
   0x4   :  { %1784 = vmatprep.mubr.bf16.mxu0 %v3686_v6  ;;  %1864 = vmatprep.mubr.bf16.mxu1 %v3689_v8  ;;  %v3674_v9 = vld [vmem:[%s5326_s1 + $0x30] sm:$0xff]   ;;  %v3675_v10 = vld [vmem:[%s5326_s1 + $0x38] sm:$0xff]   ;;  %v3676_v11 = vld [vmem:[%s5326_s1 + $0x40] sm:$0xff]  }
   0x5   :  { %v3677_v12 = vld [vmem:[%s5326_s1 + $0x48] sm:$0xff]   ;;  %v3678_v13 = vld [vmem:[%s5326_s1 + $0x50] sm:$0xff]   ;;  %v3679_v14 = vld [vmem:[%s5326_s1 + $0x58] sm:$0xff]  }
   0x6   :  { %1755 = vmatpush1.bf16.msra.mxu0 %v3669_v2  ;;  %3557 = vmatpush1.bf16.msra.mxu1 %v3669_v2  ;;  %v3680_v15 = vld [vmem:[%s5326_s1 + $0x60] sm:$0xff]   ;;  %v3681_v16 = vld [vmem:[%s5326_s1 + $0x68] sm:$0xff]   ;;  %v3682_v17 = vld [vmem:[%s5326_s1 + $0x70] sm:$0xff]  }
   0x7   :  { %1756 = vmatprep.subr.bf16.mxu0 %v3970_v0  ;;  %3542 = vmatprep.subr.bf16.mxu1 %v3970_v0  ;;  %v3683_v18 = vld [vmem:[%s5326_s1 + $0x78] sm:$0xff]   ;;  %v3696_v19 = vld [vmem:[%s5326_s1 + $0x100] sm:$0xff]   ;;  %v3730_v25 = vld [vmem:[%s5326_s1 + $0x108] sm:$0xff]  }
   0x8   :  { %v3684_v20 = vld [vmem:[%s5327_s0] ss:$20 sps:$4 sm:$0xff]   ;;  %v3687_v21 = vld [vmem:[%s5327_s0 + $0x190] ss:$20 sps:$4 sm:$0xff]   ;;  %v3691_v26 = vld [vmem:[%s5326_s1 + $0x88] sm:$0xff]  }
   0x9   :  { %v3690_v22 = vld [vmem:[%s5326_s1 + $0x80] sm:$0xff]   ;;  %v3694_v24 = vld [vmem:[%s5327_s0 + $0x1bc] ss:$20 sps:$4 sm:$0xff]   ;;  %v3698_v28 = vld [vmem:[%s5327_s0 + $0x1b8] ss:$20 sps:$4 sm:$0xff]  }
   0xa   :  { %1757 = vmatpush1.bf16.msra.mxu0 %v3670_v3  ;;  %3558 = vmatpush1.bf16.msra.mxu1 %v3670_v3  ;;  %v3697_v27 = vld [vmem:[%s5327_s0 + $0x28] ss:$20 sps:$4 sm:$0xff]   ;;  %v3699_v29 = vld [vmem:[%s5326_s1 + $0x90] sm:$0xff]   ;;  %v3702_v31 = vld [vmem:[%s5327_s0 + $0x1e4] ss:$20 sps:$4 sm:$0xff]  }
   0xb   :  { %1758 = vmatprep.subr.bf16.mxu0 %v3970_v0  ;;  %3543 = vmatprep.subr.bf16.mxu1 %v3970_v0  ;;  %v3700_v30 = vld [vmem:[%s5327_s0 + $0x54] ss:$20 sps:$4 sm:$0xff]   ;;  %v3706_v33 = vld [vmem:[%s5326_s1 + $0x98] sm:$0xff]   ;;  %v3704_v34 = vld [vmem:[%s5327_s0 + $0x50] ss:$20 sps:$4 sm:$0xff]  }
   0xc   :  { %v3768_v32 = vld [vmem:[%s5326_s1 + $0x110] sm:$0xff]   ;;  %v3797_v36 = vld [vmem:[%s5326_s1 + $0x118] sm:$0xff]   ;;  %v3707_v37 = vld [vmem:[%s5326_s1 + $0xa0] sm:$0xff]  }
   0xd   :  { %v3705_v35 = vld [vmem:[%s5327_s0 + $0x1e0] ss:$20 sps:$4 sm:$0xff]   ;;  %v3708_v38 = vld [vmem:[%s5327_s0 + $0x7c] ss:$20 sps:$4 sm:$0xff]   ;;  %v3714_v40 = vld [vmem:[%s5326_s1 + $0xa8] sm:$0xff]  }
   0xe   :  { %1759 = vmatpush1.bf16.msra.mxu0 %v3671_v4  ;;  %3559 = vmatpush1.bf16.msra.mxu1 %v3671_v4  ;;  %v3710_v39 = vld [vmem:[%s5327_s0 + $0x20c] ss:$20 sps:$4 sm:$0xff]   ;;  %v3713_v42 = vld [vmem:[%s5327_s0 + $0x208] ss:$20 sps:$4 sm:$0xff]   ;;  %v3715_v43 = vld [vmem:[%s5327_s0 + $0xa4] ss:$20 sps:$4 sm:$0xff]  }
   0xf   :  { %1760 = vmatprep.subr.bf16.mxu0 %v3970_v0  ;;  %3544 = vmatprep.subr.bf16.mxu1 %v3970_v0  ;;  %v3712_v41 = vld [vmem:[%s5327_s0 + $0x78] ss:$20 sps:$4 sm:$0xff]   ;;  %v3717_v44 = vld [vmem:[%s5327_s0 + $0x234] ss:$20 sps:$4 sm:$0xff]   ;;  %v3824_v46 = vld [vmem:[%s5326_s1 + $0x120] sm:$0xff]  }
  0x10   :  { %v3719_v45 = vld [vmem:[%s5326_s1 + $0xb0] sm:$0xff]   ;;  %v3722_v49 = vld [vmem:[%s5326_s1 + $0xb8] sm:$0xff]   ;;  %v3723_v50 = vld [vmem:[%s5327_s0 + $0xcc] ss:$20 sps:$4 sm:$0xff]  }
  0x11   :  { %v3720_v47 = vld [vmem:[%s5327_s0 + $0xa0] ss:$20 sps:$4 sm:$0xff]   ;;  %v3721_v48 = vld [vmem:[%s5327_s0 + $0x230] ss:$20 sps:$4 sm:$0xff]   ;;  %v3731_v53 = vld [vmem:[%s5326_s1 + $0xc8] sm:$0xff]  }
  0x12   :  { %1761 = vmatpush1.bf16.msra.mxu0 %v3672_v5  ;;  %3560 = vmatpush1.bf16.msra.mxu1 %v3672_v5  ;;  %v3725_v51 = vld [vmem:[%s5327_s0 + $0x25c] ss:$20 sps:$4 sm:$0xff]   ;;  %v3729_v52 = vld [vmem:[%s5326_s1 + $0xc0] sm:$0xff]   ;;  %v3728_v55 = vld [vmem:[%s5327_s0 + $0x258] ss:$20 sps:$4 sm:$0xff]  }
  0x13   :  { %1762 = vmatprep.subr.bf16.mxu0 %v3970_v0  ;;  %3545 = vmatprep.subr.bf16.mxu1 %v3970_v0  ;;  %v3727_v54 = vld [vmem:[%s5327_s0 + $0xc8] ss:$20 sps:$4 sm:$0xff]   ;;  %v3734_v57 = vld [vmem:[%s5327_s0 + $0x284] ss:$20 sps:$4 sm:$0xff]   ;;  %v3738_v58 = vld [vmem:[%s5326_s1 + $0xd0] sm:$0xff]  }
  0x14   :  { %v3732_v56 = vld [vmem:[%s5327_s0 + $0xf4] ss:$20 sps:$4 sm:$0xff]   ;;  %v3745_v59 = vld [vmem:[%s5326_s1 + $0xd8] sm:$0xff]   ;;  %v3736_v60 = vld [vmem:[%s5327_s0 + $0xf0] ss:$20 sps:$4 sm:$0xff]  }
  0x15   :  { %v3737_v61 = vld [vmem:[%s5327_s0 + $0x280] ss:$20 sps:$4 sm:$0xff]   ;;  %v3739_v62 = vld [vmem:[%s5327_s0 + $0x11c] ss:$20 sps:$4 sm:$0xff]   ;;  %v3753_v2 = vld [vmem:[%s5326_s1 + $0xe8] sm:$0xff]  }
  0x16   :  { %1763 = vmatpush1.bf16.msra.mxu0 %v3673_v7  ;;  %3561 = vmatpush1.bf16.msra.mxu1 %v3673_v7  ;;  %v3741_v63 = vld [vmem:[%s5327_s0 + $0x2ac] ss:$20 sps:$4 sm:$0xff]   ;;  %v3744_v4 = vld [vmem:[%s5327_s0 + $0x2a8] ss:$20 sps:$4 sm:$0xff]   ;;  %v3747_v5 = vld [vmem:[%s5327_s0 + $0x144] ss:$20 sps:$4 sm:$0xff]  }
  0x17   :  { %1764 = vmatprep.subr.bf16.mxu0 %v3970_v0  ;;  %3546 = vmatprep.subr.bf16.mxu1 %v3970_v0  ;;  %v3746_v1 = vld [vmem:[%s5326_s1 + $0xe0] sm:$0xff]   ;;  %v3743_v3 = vld [vmem:[%s5327_s0 + $0x118] ss:$20 sps:$4 sm:$0xff]   ;;  %v3749_v6 = vld [vmem:[%s5327_s0 + $0x2d4] ss:$20 sps:$4 sm:$0xff]  }
  0x18   :  { %v3758_v7 = vld [vmem:[%s5326_s1 + $0xf0] sm:$0xff]   ;;  %v3761_v8 = vld [vmem:[%s5326_s1 + $0xf8] sm:$0xff]  }
  0x1a   :  { %1765 = vmatpush1.bf16.msra.mxu0 %v3674_v9  ;;  %3562 = vmatpush1.bf16.msra.mxu1 %v3674_v9  ;;  %v3751_v9 = vld [vmem:[%s5327_s0 + $0x140] ss:$20 sps:$4 sm:$0xff]  }
  0x1b   :  { %1766 = vmatprep.subr.bf16.mxu0 %v3970_v0  ;;  %3547 = vmatprep.subr.bf16.mxu1 %v3970_v0 }
  0x1e   :  { %1767 = vmatpush1.bf16.msra.mxu0 %v3675_v10  ;;  %3563 = vmatpush1.bf16.msra.mxu1 %v3675_v10  ;;  %v3752_v10 = vld [vmem:[%s5327_s0 + $0x2d0] ss:$20 sps:$4 sm:$0xff]  }
  0x1f   :  { %1768 = vmatprep.subr.bf16.mxu0 %v3970_v0  ;;  %3548 = vmatprep.subr.bf16.mxu1 %v3970_v0 }
  0x22   :  { %1769 = vmatpush1.bf16.msra.mxu0 %v3676_v11  ;;  %3564 = vmatpush1.bf16.msra.mxu1 %v3676_v11  ;;  %v3754_v11 = vld [vmem:[%s5327_s0 + $0x16c] ss:$20 sps:$4 sm:$0xff]  }
  0x23   :  { %1770 = vmatprep.subr.bf16.mxu0 %v3970_v0  ;;  %3549 = vmatprep.subr.bf16.mxu1 %v3970_v0 }
  0x26   :  { %1771 = vmatpush1.bf16.msra.mxu0 %v3677_v12  ;;  %3565 = vmatpush1.bf16.msra.mxu1 %v3677_v12  ;;  %v3756_v12 = vld [vmem:[%s5327_s0 + $0x2fc] ss:$20 sps:$4 sm:$0xff]  }
  0x27   :  { %1772 = vmatprep.subr.bf16.mxu0 %v3970_v0  ;;  %3550 = vmatprep.subr.bf16.mxu1 %v3970_v0 }
  0x2a   :  { %1773 = vmatpush1.bf16.msra.mxu0 %v3678_v13  ;;  %3566 = vmatpush1.bf16.msra.mxu1 %v3678_v13  ;;  %v3855_v13 = vld [vmem:[%s5326_s1 + $0x128] ss:$0 sps:$4 sm:$0xff]  }
  0x2b   :  { %1774 = vmatprep.subr.bf16.mxu0 %v3970_v0  ;;  %3551 = vmatprep.subr.bf16.mxu1 %v3970_v0 }
  0x2e   :  { %1775 = vmatpush1.bf16.msra.mxu0 %v3679_v14  ;;  %3567 = vmatpush1.bf16.msra.mxu1 %v3679_v14  ;;  %v3759_v14 = vld [vmem:[%s5327_s0 + $0x168] ss:$20 sps:$4 sm:$0xff]  }
  0x2f   :  { %1776 = vmatprep.subr.bf16.mxu0 %v3970_v0  ;;  %3552 = vmatprep.subr.bf16.mxu1 %v3970_v0 }
  0x32   :  { %1777 = vmatpush1.bf16.msra.mxu0 %v3680_v15  ;;  %3568 = vmatpush1.bf16.msra.mxu1 %v3680_v15  ;;  %v3760_v15 = vld [vmem:[%s5327_s0 + $0x2f8] ss:$20 sps:$4 sm:$0xff]  }
  0x33   :  { %1778 = vmatprep.subr.bf16.mxu0 %v3970_v0  ;;  %3553 = vmatprep.subr.bf16.mxu1 %v3970_v0 }
  0x36   :  { %1779 = vmatpush1.bf16.msra.mxu0 %v3681_v16  ;;  %3569 = vmatpush1.bf16.msra.mxu1 %v3681_v16  ;;  %v3762_v16 = vld [vmem:[%s5327_s0 + $0x324] ss:$20 sps:$4 sm:$0xff]  }
  0x37   :  { %1780 = vmatprep.subr.bf16.mxu0 %v3970_v0  ;;  %3554 = vmatprep.subr.bf16.mxu1 %v3970_v0 }
  0x3a   :  { %1781 = vmatpush1.bf16.msra.mxu0 %v3682_v17  ;;  %3570 = vmatpush1.bf16.msra.mxu1 %v3682_v17  ;;  %v3766_v17 = vld [vmem:[%s5327_s0 + $0xc] ss:$20 sps:$4 sm:$0xff]  }
  0x3b   :  { %1782 = vmatprep.subr.bf16.mxu0 %v3970_v0  ;;  %3555 = vmatprep.subr.bf16.mxu1 %v3970_v0 }
  0x3e   :  { %1783 = vmatpush1.bf16.msra.mxu0 %v3683_v18  ;;  %3571 = vmatpush1.bf16.msra.mxu1 %v3683_v18  ;;  %v3764_v18 = vld [vmem:[%s5327_s0 + $0x8] ss:$20 sps:$4 sm:$0xff]  }
  0x3f   :  { %2088 = vmatprep.subr.bf16.mxu0 %v3970_v0  ;;  %3452 = vmatprep.subr.bf16.mxu1 %v3696_v19 }
  0x41   :  { %1785 = vmatmul.mubr.bf16.vlgmr.msra.gmra.mrb[0].mxu0 %v3684_v20  ;;  %1865 = vmatmul.mubr.bf16.vlgmr.msra.gmra.mrb[0].mxu1 %v3687_v21  ;;  %v3769_v20 = vld [vmem:[%s5327_s0 + $0x34c] ss:$20 sps:$4 sm:$0xff]   ;;  %v3771_v21 = vld [vmem:[%s5327_s0 + $0x34] ss:$20 sps:$4 sm:$0xff]  }
  0x42   :  { %2089 = vmatpush1.bf16.msra.mxu0 %v3690_v22  ;;  %1792 = vmatprep.mubr.bf16.mxu0 %v3692_v23  ;;  %v3773_v22 = vld [vmem:[%s5327_s0 + $0x348] ss:$20 sps:$4 sm:$0xff]   ;;  %v3774_v23 = vld [vmem:[%s5327_s0 + $0x30] ss:$20 sps:$4 sm:$0xff]  }
  0x43   :  { %2090 = vmatprep.subr.bf16.mxu0 %v3970_v0  ;;  %1872 = vmatprep.mubr.bf16.mxu1 %v3694_v24  ;;  %v3775_v24 = vld [vmem:[%s5327_s0 + $0x374] ss:$20 sps:$4 sm:$0xff]  }
  0x44   :  { %3453 = vmatpush3.bf16.msra.mxu1 %v3696_v19  ;;  %v3767_v19 = vld [vmem:[%s5327_s0 + $0x320] ss:$20 sps:$4 sm:$0xff]  }
  0x45   :  { %3454 = vmatprep.subr.bf16.mxu1 %v3730_v25 }
  0x46   :  { %2091 = vmatpush1.bf16.msra.mxu0 %v3691_v26  ;;  %v3779_v26 = vld [vmem:[%s5327_s0 + $0x370] ss:$20 sps:$4 sm:$0xff]  }
  0x47   :  { %2092 = vmatprep.subr.bf16.mxu0 %v3970_v0 }
  0x48   :  { %3455 = vmatpush3.bf16.msra.mxu1 %v3730_v25  ;;  %v3777_v25 = vld [vmem:[%s5327_s0 + $0x5c] ss:$20 sps:$4 sm:$0xff]  }
  0x49   :  { %1793 = vmatmul.mubr.bf16.gmra.mrb[4].mxu0 %v3697_v27  ;;  %1873 = vmatmul.mubr.bf16.gmra.mrb[4].mxu1 %v3698_v28  ;;  %v3780_v27 = vld [vmem:[%s5327_s0 + $0x58] ss:$20 sps:$4 sm:$0xff]   ;;  %v3781_v28 = vld [vmem:[%s5327_s0 + $0x39c] ss:$20 sps:$4 sm:$0xff]  }
  0x4a   :  { %2093 = vmatpush1.bf16.msra.mxu0 %v3699_v29  ;;  %1800 = vmatprep.mubr.bf16.mxu0 %v3700_v30  ;;  %v3783_v29 = vld [vmem:[%s5327_s0 + $0x84] ss:$20 sps:$4 sm:$0xff]  }
  0x4b   :  { %1880 = vmatprep.mubr.bf16.mxu1 %v3702_v31  ;;  %2094 = vmatprep.subr.bf16.mxu0 %v3970_v0  ;;  %v3785_v30 = vld [vmem:[%s5327_s0 + $0x398] ss:$20 sps:$4 sm:$0xff]   ;;  %v3786_v31 = vld [vmem:[%s5327_s0 + $0x80] ss:$20 sps:$4 sm:$0xff]  }
  0x4c   :  { %3456 = vmatprep.subr.bf16.mxu1 %v3768_v32 }
  0x4d   :  { %3457 = vmatpush3.bf16.msra.mxu1 %v3768_v32  ;;  %v3787_v32 = vld [vmem:[%s5327_s0 + $0x3c4] ss:$20 sps:$4 sm:$0xff]  }
  0x4e   :  { %2095 = vmatpush1.bf16.msra.mxu0 %v3706_v33  ;;  %3458 = vmatprep.subr.bf16.mxu1 %v3797_v36  ;;  %v3789_v33 = vld [vmem:[%s5327_s0 + $0xac] ss:$20 sps:$4 sm:$0xff]  }
  0x4f   :  { %2096 = vmatprep.subr.bf16.mxu0 %v3970_v0 }
  0x51   :  { %1801 = vmatmul.mubr.bf16.gmra.mrb[8].mxu0 %v3704_v34  ;;  %1881 = vmatmul.mubr.bf16.gmra.mrb[8].mxu1 %v3705_v35  ;;  %v3791_v34 = vld [vmem:[%s5327_s0 + $0x3c0] ss:$20 sps:$4 sm:$0xff]   ;;  %v3792_v35 = vld [vmem:[%s5327_s0 + $0xa8] ss:$20 sps:$4 sm:$0xff]  }
  0x52   :  { %2097 = vmatpush1.bf16.msra.mxu0 %v3707_v37  ;;  %1808 = vmatprep.mubr.bf16.mxu0 %v3708_v38  ;;  %v3795_v37 = vld [vmem:[%s5327_s0 + $0xd4] ss:$20 sps:$4 sm:$0xff]  }
  0x53   :  { %1888 = vmatprep.mubr.bf16.mxu1 %v3710_v39  ;;  %2098 = vmatprep.subr.bf16.mxu0 %v3970_v0  ;;  %v3798_v38 = vld [vmem:[%s5327_s0 + $0x3e8] ss:$20 sps:$4 sm:$0xff]   ;;  %v3799_v39 = vld [vmem:[%s5327_s0 + $0xd0] ss:$20 sps:$4 sm:$0xff]  }
  0x54   :  { %3459 = vmatpush3.bf16.msra.mxu1 %v3797_v36  ;;  %v3793_v36 = vld [vmem:[%s5327_s0 + $0x3ec] ss:$20 sps:$4 sm:$0xff]  }
  0x55   :  { %3460 = vmatprep.subr.bf16.mxu1 %v3824_v46 }
  0x56   :  { %2099 = vmatpush1.bf16.msra.mxu0 %v3714_v40  ;;  %v3800_v40 = vld [vmem:[%s5327_s0 + $0x414] ss:$20 sps:$4 sm:$0xff]  }
  0x57   :  { %2100 = vmatprep.subr.bf16.mxu0 %v3970_v0 }
  0x58   :  { %3461 = vmatpush3.bf16.msra.mxu1 %v3824_v46  ;;  %v3810_v46 = vld [vmem:[%s5327_s0 + $0x438] ss:$20 sps:$4 sm:$0xff]  }
  0x59   :  { %1809 = vmatmul.mubr.bf16.gmra.mrb[12].mxu0 %v3712_v41  ;;  %1889 = vmatmul.mubr.bf16.gmra.mrb[12].mxu1 %v3713_v42  ;;  %v3802_v41 = vld [vmem:[%s5327_s0 + $0xfc] ss:$20 sps:$4 sm:$0xff]  }
  0x5a   :  { %1816 = vmatprep.mubr.bf16.mxu0 %v3715_v43  ;;  %1896 = vmatprep.mubr.bf16.mxu1 %v3717_v44  ;;  %v3804_v42 = vld [vmem:[%s5327_s0 + $0x410] ss:$20 sps:$4 sm:$0xff]   ;;  %v3805_v43 = vld [vmem:[%s5327_s0 + $0xf8] ss:$20 sps:$4 sm:$0xff]  }
  0x5b   :  { %2101 = vmatpush1.bf16.msra.mxu0 %v3719_v45  ;;  %3666 = vmatprep.subr.msk.bf16.mxu1 %vm1748_vm0, %v3855_v13  ;;  %v3806_v44 = vld [vmem:[%s5327_s0 + $0x43c] ss:$20 sps:$4 sm:$0xff]   ;;  %v3808_v45 = vld [vmem:[%s5327_s0 + $0x124] ss:$20 sps:$4 sm:$0xff]  }
  0x5c   :  { %2102 = vmatprep.subr.bf16.mxu0 %v3970_v0 }
  0x5f   :  { %2103 = vmatpush1.bf16.msra.mxu0 %v3722_v49  ;;  %v3814_v49 = vld [vmem:[%s5327_s0 + $0x14c] ss:$20 sps:$4 sm:$0xff]  }
  0x60   :  { %2104 = vmatprep.subr.bf16.mxu0 %v3970_v0 }
  0x61   :  { %1817 = vmatmul.mubr.bf16.gmra.mrb[16].mxu0 %v3720_v47  ;;  %1897 = vmatmul.mubr.bf16.gmra.mrb[16].mxu1 %v3721_v48  ;;  %v3811_v47 = vld [vmem:[%s5327_s0 + $0x120] ss:$20 sps:$4 sm:$0xff]   ;;  %v3812_v48 = vld [vmem:[%s5327_s0 + $0x464] ss:$20 sps:$4 sm:$0xff]  }
  0x62   :  { %1824 = vmatprep.mubr.bf16.mxu0 %v3723_v50  ;;  %1904 = vmatprep.mubr.bf16.mxu1 %v3725_v51  ;;  %v3816_v50 = vld [vmem:[%s5327_s0 + $0x460] ss:$20 sps:$4 sm:$0xff]   ;;  %v3817_v51 = vld [vmem:[%s5327_s0 + $0x148] ss:$20 sps:$4 sm:$0xff]  }
  0x63   :  { %2105 = vmatpush1.bf16.msra.mxu0 %v3729_v52  ;;  %v3818_v52 = vld [vmem:[%s5327_s0 + $0x48c] ss:$20 sps:$4 sm:$0xff]  }
  0x64   :  { %2106 = vmatprep.subr.bf16.mxu0 %v3970_v0 }
  0x67   :  { %2107 = vmatpush1.bf16.msra.mxu0 %v3731_v53  ;;  %v3820_v53 = vld [vmem:[%s5327_s0 + $0x174] ss:$20 sps:$4 sm:$0xff]  }
  0x68   :  { %2108 = vmatprep.subr.bf16.mxu0 %v3970_v0 }
  0x69   :  { %1825 = vmatmul.mubr.bf16.gmra.mrb[20].mxu0 %v3727_v54  ;;  %1905 = vmatmul.mubr.bf16.gmra.mrb[20].mxu1 %v3728_v55  ;;  %v3822_v54 = vld [vmem:[%s5327_s0 + $0x488] ss:$20 sps:$4 sm:$0xff]   ;;  %v3823_v55 = vld [vmem:[%s5327_s0 + $0x170] ss:$20 sps:$4 sm:$0xff]  }
  0x6a   :  { %1832 = vmatprep.mubr.bf16.mxu0 %v3732_v56  ;;  %1912 = vmatprep.mubr.bf16.mxu1 %v3734_v57  ;;  %v3825_v56 = vld [vmem:[%s5327_s0 + $0x4b4] ss:$20 sps:$4 sm:$0xff]   ;;  %v3827_v57 = vld [vmem:[%s5327_s0 + $0x19c] ss:$20 sps:$4 sm:$0xff]  }
  0x6b   :  { %2109 = vmatpush1.bf16.msra.mxu0 %v3738_v58  ;;  %v3829_v58 = vld [vmem:[%s5327_s0 + $0x4b0] ss:$20 sps:$4 sm:$0xff]  }
  0x6c   :  { %2110 = vmatprep.subr.bf16.mxu0 %v3970_v0 }
  0x6f   :  { %2111 = vmatpush1.bf16.msra.mxu0 %v3745_v59  ;;  %v3830_v59 = vld [vmem:[%s5327_s0 + $0x198] ss:$20 sps:$4 sm:$0xff]  }
  0x70   :  { %2112 = vmatprep.subr.bf16.mxu0 %v3970_v0 }
  0x71   :  { %1833 = vmatmul.mubr.bf16.gmra.mrb[24].mxu0 %v3736_v60  ;;  %1913 = vmatmul.mubr.bf16.gmra.mrb[24].mxu1 %v3737_v61  ;;  %v3831_v60 = vld [vmem:[%s5327_s0 + $0x4dc] ss:$20 sps:$4 sm:$0xff]   ;;  %v3833_v61 = vld [vmem:[%s5327_s0 + $0x1c4] ss:$20 sps:$4 sm:$0xff]  }
  0x72   :  { %1840 = vmatprep.mubr.bf16.mxu0 %v3739_v62  ;;  %1920 = vmatprep.mubr.bf16.mxu1 %v3741_v63  ;;  %v3835_v62 = vld [vmem:[%s5327_s0 + $0x4d8] ss:$20 sps:$4 sm:$0xff]   ;;  %v3836_v63 = vld [vmem:[%s5327_s0 + $0x1c0] ss:$20 sps:$4 sm:$0xff]  }
  0x73   :  { %2113 = vmatpush1.bf16.msra.mxu0 %v3746_v1  ;;  %v3837_v1 = vld [vmem:[%s5327_s0 + $0x504] ss:$20 sps:$4 sm:$0xff]  }
  0x74   :  { %2114 = vmatprep.subr.bf16.mxu0 %v3970_v0 }
  0x77   :  { %2115 = vmatpush1.bf16.msra.mxu0 %v3753_v2  ;;  %v3839_v2 = vld [vmem:[%s5327_s0 + $0x1ec] ss:$20 sps:$4 sm:$0xff]  }
  0x78   :  { %2116 = vmatprep.subr.bf16.mxu0 %v3970_v0 }
  0x79   :  { %1841 = vmatmul.mubr.bf16.gmra.mrb[28].mxu0 %v3743_v3  ;;  %1921 = vmatmul.mubr.bf16.gmra.mrb[28].mxu1 %v3744_v4  ;;  %v3841_v3 = vld [vmem:[%s5327_s0 + $0x500] ss:$20 sps:$4 sm:$0xff]   ;;  %v3842_v4 = vld [vmem:[%s5327_s0 + $0x1e8] ss:$20 sps:$4 sm:$0xff]  }
  0x7a   :  { %1848 = vmatprep.mubr.bf16.mxu0 %v3747_v5  ;;  %1928 = vmatprep.mubr.bf16.mxu1 %v3749_v6  ;;  %v3843_v5 = vld [vmem:[%s5327_s0 + $0x52c] ss:$20 sps:$4 sm:$0xff]   ;;  %v3845_v6 = vld [vmem:[%s5327_s0 + $0x214] ss:$20 sps:$4 sm:$0xff]  }
  0x7b   :  { %2117 = vmatpush1.bf16.msra.mxu0 %v3758_v7  ;;  %v3847_v7 = vld [vmem:[%s5327_s0 + $0x528] ss:$20 sps:$4 sm:$0xff]  }
  0x7c   :  { %2118 = vmatprep.subr.bf16.mxu0 %v3970_v0  ;;  %v1750_v0 = vsel %vm1748_vm0, %v3855_v13, 0  ;;  %v3856_v13 = vld [vmem:[%s5327_s0 + $0x57c] ss:$20 sps:$4 sm:$0xff]  }
  0x7d   :  { %3463 = vmatpush3.bf16.msra.mxu1 %v1750_v0  ;;  %v3861_v0 = vld [vmem:[%s5327_s0 + $0x260] ss:$20 sps:$4 sm:$0xff]  }
  0x7f   :  { %2119 = vmatpush1.bf16.msra.mxu0 %v3761_v8  ;;  %v3848_v8 = vld [vmem:[%s5327_s0 + $0x210] ss:$20 sps:$4 sm:$0xff]  }
  0x81   :  { %1849 = vmatmul.mubr.bf16.gmra.mrb[32].mxu0 %v3751_v9  ;;  %1929 = vmatmul.mubr.bf16.gmra.mrb[32].mxu1 %v3752_v10  ;;  %v3849_v9 = vld [vmem:[%s5327_s0 + $0x554] ss:$20 sps:$4 sm:$0xff]   ;;  %v3851_v10 = vld [vmem:[%s5327_s0 + $0x23c] ss:$20 sps:$4 sm:$0xff]  }
  0x82   :  { %1856 = vmatprep.mubr.bf16.mxu0 %v3754_v11  ;;  %1936 = vmatprep.mubr.bf16.mxu1 %v3756_v12  ;;  %v3853_v11 = vld [vmem:[%s5327_s0 + $0x550] ss:$20 sps:$4 sm:$0xff]   ;;  %v3854_v12 = vld [vmem:[%s5327_s0 + $0x238] ss:$20 sps:$4 sm:$0xff]  }
  0x89   :  { %1857 = vmatmul.mubr.bf16.gmra.mrb[36].mxu0 %v3759_v14  ;;  %1937 = vmatmul.mubr.bf16.gmra.mrb[36].mxu1 %v3760_v15  ;;  %v3858_v14 = vld [vmem:[%s5327_s0 + $0x264] ss:$20 sps:$4 sm:$0xff]  }
  0x8a   :  { %1944 = vmatprep.mubr.bf16.mxu1 %v3762_v16  ;;  %2120 = vmatprep.mubr.bf16.mxu0 %v3766_v17  ;;  %v3860_v15 = vld [vmem:[%s5327_s0 + $0x578] ss:$20 sps:$4 sm:$0xff]  }
  0x8b   :  { %v3862_v16 = vld [vmem:[%s5327_s0 + $0x5a4] ss:$20 sps:$4 sm:$0xff]   ;;  %v3864_v17 = vld [vmem:[%s5327_s0 + $0x28c] ss:$20 sps:$4 sm:$0xff]  }
  0x91   :  { %1945 = vmatmul.mubr.bf16.gmra.mrb[40].mxu1 %v3767_v19  ;;  %2121 = vmatmul.mubr.bf16.vlgmr.msra.gmra.mrb[0].mxu0 %v3764_v18  ;;  %v313_v18 = vld [vmem:[%s5327_s0 + $0x5c8] sm:$0xff]  ;;  %v3866_v19 = vld [vmem:[%s5327_s0 + $0x5a0] ss:$20 sps:$4 sm:$0xff]  }
  0x92   :  { %1952 = vmatprep.mubr.bf16.mxu1 %v3769_v20  ;;  %2128 = vmatprep.mubr.bf16.mxu0 %v3771_v21  ;;  %v3867_v20 = vld [vmem:[%s5327_s0 + $0x288] ss:$20 sps:$4 sm:$0xff]   ;;  %v3328_v21 = vcombine.high %v313_v18, %v313_v18 }
  0x99   :  { %1953 = vmatmul.mubr.bf16.gmra.mrb[44].mxu1 %v3773_v22  ;;  %2129 = vmatmul.mubr.bf16.gmra.mrb[4].mxu0 %v3774_v23  ;;  %v3869_v22 = vld [vmem:[%s5327_s0 + $0x2b4] ss:$20 sps:$4 sm:$0xff]  }
  0x9a   :  { %1960 = vmatprep.mubr.bf16.mxu1 %v3775_v24  ;;  %2136 = vmatprep.mubr.bf16.mxu0 %v3777_v25  ;;  %v3327_v24 = vcombine.low %v313_v18, %v313_v18  ;;  %v3872_v25 = vld [vmem:[%s5327_s0 + $0x2b0] ss:$20 sps:$4 sm:$0xff]  }
  0xa1   :  { %1961 = vmatmul.mubr.bf16.gmra.mrb[48].mxu1 %v3779_v26  ;;  %2137 = vmatmul.mubr.bf16.gmra.mrb[8].mxu0 %v3780_v27 }
  0xa2   :  { %1968 = vmatprep.mubr.bf16.mxu1 %v3781_v28  ;;  %2144 = vmatprep.mubr.bf16.mxu0 %v3783_v29  ;;  %v3873_v28 = vld [vmem:[%s5327_s0 + $0x2dc] ss:$20 sps:$4 sm:$0xff]  }
  0xa3   :  { %v3875_v29 = vld [vmem:[%s5327_s0 + $0x10] ss:$20 sps:$4 sm:$0xff]  }
  0xa9   :  { %1969 = vmatmul.mubr.bf16.gmra.mrb[52].mxu1 %v3785_v30  ;;  %2145 = vmatmul.mubr.bf16.gmra.mrb[12].mxu0 %v3786_v31 }
  0xaa   :  { %1976 = vmatprep.mubr.bf16.mxu1 %v3787_v32  ;;  %2152 = vmatprep.mubr.bf16.mxu0 %v3789_v33  ;;  %v3876_v32 = vld [vmem:[%s5327_s0 + $0x2d8] ss:$20 sps:$4 sm:$0xff]  }
  0xab   :  { %v3877_v33 = vld [vmem:[%s5327_s0 + $0x38] ss:$20 sps:$4 sm:$0xff]  }
  0xb1   :  { %1977 = vmatmul.mubr.bf16.gmra.mrb[56].mxu1 %v3791_v34  ;;  %2153 = vmatmul.mubr.bf16.gmra.mrb[16].mxu0 %v3792_v35 }
  0xb2   :  { %1984 = vmatprep.mubr.bf16.mxu1 %v3793_v36  ;;  %2160 = vmatprep.mubr.bf16.mxu0 %v3795_v37  ;;  %v3878_v36 = vld [vmem:[%s5327_s0 + $0x304] ss:$20 sps:$4 sm:$0xff]   ;;  %v3880_v37 = vld [vmem:[%s5327_s0 + $0x60] ss:$20 sps:$4 sm:$0xff]  }
  0xb9   :  { %1985 = vmatmul.mubr.bf16.gmra.mrb[60].mxu1 %v3798_v38  ;;  %2161 = vmatmul.mubr.bf16.gmra.mrb[20].mxu0 %v3799_v39 }
  0xba   :  { %1992 = vmatprep.mubr.bf16.mxu1 %v3800_v40  ;;  %2168 = vmatprep.mubr.bf16.mxu0 %v3802_v41  ;;  %v3881_v40 = vld [vmem:[%s5327_s0 + $0x300] ss:$20 sps:$4 sm:$0xff]   ;;  %v3882_v41 = vld [vmem:[%s5327_s0 + $0x88] ss:$20 sps:$4 sm:$0xff]  }
  0xc1   :  { %1993 = vmatmul.mubr.bf16.gmra.mrb[64].mxu1 %v3804_v42  ;;  %2169 = vmatmul.mubr.bf16.gmra.mrb[24].mxu0 %v3805_v43 }
  0xc2   :  { %2000 = vmatprep.mubr.bf16.mxu1 %v3806_v44  ;;  %2176 = vmatprep.mubr.bf16.mxu0 %v3808_v45  ;;  %v3883_v44 = vld [vmem:[%s5327_s0 + $0x32c] ss:$20 sps:$4 sm:$0xff]   ;;  %v3885_v45 = vld [vmem:[%s5327_s0 + $0xb0] ss:$20 sps:$4 sm:$0xff]  }
  0xc9   :  { %2001 = vmatmul.mubr.bf16.gmra.mrb[68].mxu1 %v3810_v46  ;;  %2177 = vmatmul.mubr.bf16.gmra.mrb[28].mxu0 %v3811_v47 }
  0xca   :  { %2008 = vmatprep.mubr.bf16.mxu1 %v3812_v48  ;;  %2184 = vmatprep.mubr.bf16.mxu0 %v3814_v49  ;;  %v3886_v48 = vld [vmem:[%s5327_s0 + $0x328] ss:$20 sps:$4 sm:$0xff]   ;;  %v3887_v49 = vld [vmem:[%s5327_s0 + $0xd8] ss:$20 sps:$4 sm:$0xff]  }
  0xd1   :  { %2009 = vmatmul.mubr.bf16.gmra.mrb[72].mxu1 %v3816_v50  ;;  %2185 = vmatmul.mubr.bf16.gmra.mrb[32].mxu0 %v3817_v51 }
  0xd2   :  { %2016 = vmatprep.mubr.bf16.mxu1 %v3818_v52  ;;  %2192 = vmatprep.mubr.bf16.mxu0 %v3820_v53  ;;  %v3888_v52 = vld [vmem:[%s5327_s0 + $0x354] ss:$20 sps:$4 sm:$0xff]  }
  0xd3   :  { %v3890_v53 = vld [vmem:[%s5327_s0 + $0x100] ss:$20 sps:$4 sm:$0xff]  }
  0xd9   :  { %2017 = vmatmul.mubr.bf16.gmra.mrb[76].mxu1 %v3822_v54  ;;  %2193 = vmatmul.mubr.bf16.gmra.mrb[36].mxu0 %v3823_v55 }
  0xda   :  { %2024 = vmatprep.mubr.bf16.mxu1 %v3825_v56  ;;  %2200 = vmatprep.mubr.bf16.mxu0 %v3827_v57  ;;  %v3891_v56 = vld [vmem:[%s5327_s0 + $0x350] ss:$20 sps:$4 sm:$0xff]   ;;  %v3892_v57 = vld [vmem:[%s5327_s0 + $0x128] ss:$20 sps:$4 sm:$0xff]  }
  0xe1   :  { %2025 = vmatmul.mubr.bf16.gmra.mrb[80].mxu1 %v3829_v58  ;;  %2201 = vmatmul.mubr.bf16.gmra.mrb[40].mxu0 %v3830_v59 }
  0xe2   :  { %2032 = vmatprep.mubr.bf16.mxu1 %v3831_v60  ;;  %2208 = vmatprep.mubr.bf16.mxu0 %v3833_v61  ;;  %v3893_v60 = vld [vmem:[%s5327_s0 + $0x37c] ss:$20 sps:$4 sm:$0xff]  }
  0xe3   :  { %v3895_v61 = vld [vmem:[%s5327_s0 + $0x150] ss:$20 sps:$4 sm:$0xff]  }
  0xe9   :  { %2033 = vmatmul.mubr.bf16.gmra.mrb[84].mxu1 %v3835_v62  ;;  %2209 = vmatmul.mubr.bf16.gmra.mrb[44].mxu0 %v3836_v63 }
  0xea   :  { %2040 = vmatprep.mubr.bf16.mxu1 %v3837_v1  ;;  %2216 = vmatprep.mubr.bf16.mxu0 %v3839_v2  ;;  %v3896_v1 = vld [vmem:[%s5327_s0 + $0x378] ss:$20 sps:$4 sm:$0xff]  }
  0xeb   :  { %v3897_v2 = vld [vmem:[%s5327_s0 + $0x178] ss:$20 sps:$4 sm:$0xff]  }
  0xf1   :  { %2041 = vmatmul.mubr.bf16.gmra.mrb[88].mxu1 %v3841_v3  ;;  %2217 = vmatmul.mubr.bf16.gmra.mrb[48].mxu0 %v3842_v4 }
  0xf2   :  { %2048 = vmatprep.mubr.bf16.mxu1 %v3843_v5  ;;  %2224 = vmatprep.mubr.bf16.mxu0 %v3845_v6  ;;  %v3898_v5 = vld [vmem:[%s5327_s0 + $0x3a4] ss:$20 sps:$4 sm:$0xff]   ;;  %v3900_v6 = vld [vmem:[%s5327_s0 + $0x1a0] ss:$20 sps:$4 sm:$0xff]  }
  0xf9   :  { %2049 = vmatmul.mubr.bf16.gmra.mrb[92].mxu1 %v3847_v7  ;;  %2225 = vmatmul.mubr.bf16.gmra.mrb[52].mxu0 %v3848_v8 }
  0xfa   :  { %2056 = vmatprep.mubr.bf16.mxu1 %v3849_v9  ;;  %2232 = vmatprep.mubr.bf16.mxu0 %v3851_v10  ;;  %v3901_v9 = vld [vmem:[%s5327_s0 + $0x3a0] ss:$20 sps:$4 sm:$0xff]   ;;  %v3902_v10 = vld [vmem:[%s5327_s0 + $0x1c8] ss:$20 sps:$4 sm:$0xff]  }
 0x101   :  { %2057 = vmatmul.mubr.bf16.gmra.mrb[96].mxu1 %v3853_v11  ;;  %2233 = vmatmul.mubr.bf16.gmra.mrb[56].mxu0 %v3854_v12 }
 0x102   :  { %2064 = vmatprep.mubr.bf16.mxu1 %v3856_v13  ;;  %2240 = vmatprep.mubr.bf16.mxu0 %v3858_v14  ;;  %v3903_v13 = vld [vmem:[%s5327_s0 + $0x3cc] ss:$20 sps:$4 sm:$0xff]   ;;  %v3905_v14 = vld [vmem:[%s5327_s0 + $0x1f0] ss:$20 sps:$4 sm:$0xff]  }
 0x109   :  { %2065 = vmatmul.mubr.bf16.gmra.mrb[100].mxu1 %v3860_v15  ;;  %2241 = vmatmul.mubr.bf16.gmra.mrb[60].mxu0 %v3861_v0 }
 0x10a   :  { %2072 = vmatprep.mubr.bf16.mxu1 %v3862_v16  ;;  %2248 = vmatprep.mubr.bf16.mxu0 %v3864_v17  ;;  %v3906_v16 = vld [vmem:[%s5327_s0 + $0x3c8] ss:$20 sps:$4 sm:$0xff]   ;;  %v3907_v17 = vld [vmem:[%s5327_s0 + $0x218] ss:$20 sps:$4 sm:$0xff]  }
 0x111   :  { %2073 = vmatmul.mubr.bf16.gmra.mrb[104].mxu1 %v3866_v19  ;;  %2249 = vmatmul.mubr.bf16.gmra.mrb[64].mxu0 %v3867_v20  ;;  %v3908_v20 = vld [vmem:[%s5327_s0 + $0x3f4] ss:$20 sps:$4 sm:$0xff]  }
 0x112   :  { %2080 = vmatprep.mubr.bf16.mxu1 %v3328_v21  ;;  %2256 = vmatprep.mubr.bf16.mxu0 %v3869_v22  ;;  %v3910_v21 = vld [vmem:[%s5327_s0 + $0x240] ss:$20 sps:$4 sm:$0xff]  }
 0x114   :  { %v4478_v23 = vpop.f32.mrb[0].mxu1 }
 0x115   :  { %v1868_v26 = vpop.f32.mrb[1].mxu1 }
 0x116   :  { %v4483_v27 = vpop.f32.mrb[2].mxu1  ;;  %v3912_v26 = vld [vmem:[%s5327_s0 + $0x268] ss:$20 sps:$4 sm:$0xff]  }
 0x117   :  { %v1871_v30 = vpop.f32.mrb[3].mxu1 }
 0x118   :  { %v3913_v30 = vld [vmem:[%s5327_s0 + $0x41c] ss:$20 sps:$4 sm:$0xff]  }
 0x119   :  { %2081 = vmatmul.mubr.bf16.gmra.mrb[108].mxu1 %v3327_v24  ;;  %2257 = vmatmul.mubr.bf16.gmra.mrb[68].mxu0 %v3872_v25  ;;  %v3911_v25 = vld [vmem:[%s5327_s0 + $0x3f0] ss:$20 sps:$4 sm:$0xff]  }
 0x11a   :  { %2264 = vmatprep.mubr.bf16.mxu0 %v3873_v28  ;;  %3464 = vmatprep.mubr.msk.bf16.mxu1 %vm1633_vm1, %v3875_v29 }
 0x11c   :  { %v4492_v31 = vpop.f32.mrb[4].mxu1 }
 0x11d   :  { %v1876_v34 = vpop.f32.mrb[5].mxu1 }
 0x11e   :  { %v4500_v35 = vpop.f32.mrb[6].mxu1 }
 0x11f   :  { %v1879_v38 = vpop.f32.mrb[7].mxu1 }
 0x121   :  { %2265 = vmatmul.mubr.bf16.gmra.mrb[72].mxu0 %v3876_v32  ;;  %3465 = vmatmul.mubr.msk.bf16.vlgmr.msra.gmra.mrb[112].mxu1 %vm1633_vm1, %v3877_v33  ;;  %v3915_v32 = vld [vmem:[%s5327_s0 + $0x290] ss:$20 sps:$4 sm:$0xff]  }
 0x122   :  { %2272 = vmatprep.mubr.bf16.mxu0 %v3878_v36  ;;  %3468 = vmatprep.mubr.msk.bf16.mxu1 %vm1633_vm1, %v3880_v37  ;;  %v3916_v36 = vld [vmem:[%s5327_s0 + $0x418] ss:$20 sps:$4 sm:$0xff]  }
 0x123   :  { %v3917_v37 = vld [vmem:[%s5327_s0 + $0x2b8] ss:$20 sps:$4 sm:$0xff]  }
 0x124   :  { %v4510_v39 = vpop.f32.mrb[8].mxu1 }
 0x125   :  { %v1884_v42 = vpop.f32.mrb[9].mxu1 }
 0x126   :  { %v4518_v43 = vpop.f32.mrb[10].mxu1  ;;  %v3920_v42 = vld [vmem:[%s5327_s0 + $0x2e0] ss:$20 sps:$4 sm:$0xff]  }
 0x127   :  { %v1887_v46 = vpop.f32.mrb[11].mxu1 }
 0x129   :  { %2273 = vmatmul.mubr.bf16.gmra.mrb[76].mxu0 %v3881_v40  ;;  %3469 = vmatmul.mubr.msk.bf16.gmra.mrb[116].mxu1 %vm1633_vm1, %v3882_v41  ;;  %v3918_v41 = vld [vmem:[%s5327_s0 + $0x444] ss:$20 sps:$4 sm:$0xff]  }
 0x12a   :  { %2280 = vmatprep.mubr.bf16.mxu0 %v3883_v44  ;;  %3472 = vmatprep.mubr.msk.bf16.mxu1 %vm1633_vm1, %v3885_v45 }
 0x12c   :  { %v4528_v47 = vpop.f32.mrb[12].mxu1 }
 0x12d   :  { %v1892_v50 = vpop.f32.mrb[13].mxu1 }
 0x12e   :  { %v4536_v51 = vpop.f32.mrb[14].mxu1  ;;  %v3922_v50 = vld [vmem:[%s5327_s0 + $0x308] ss:$20 sps:$4 sm:$0xff]  }
 0x12f   :  { %v1895_v54 = vpop.f32.mrb[15].mxu1 }
 0x131   :  { %2281 = vmatmul.mubr.bf16.gmra.mrb[80].mxu0 %v3886_v48  ;;  %3473 = vmatmul.mubr.msk.bf16.gmra.mrb[120].mxu1 %vm1633_vm1, %v3887_v49  ;;  %v3921_v49 = vld [vmem:[%s5327_s0 + $0x440] ss:$20 sps:$4 sm:$0xff]  }
 0x132   :  { %2288 = vmatprep.mubr.bf16.mxu0 %v3888_v52  ;;  %3476 = vmatprep.mubr.msk.bf16.mxu1 %vm1633_vm1, %v3890_v53 }
 0x134   :  { %v4546_v55 = vpop.f32.mrb[16].mxu1 }
 0x135   :  { %v1900_v58 = vpop.f32.mrb[17].mxu1 }
 0x136   :  { %v4554_v59 = vpop.f32.mrb[18].mxu1 }
 0x137   :  { %v1903_v62 = vpop.f32.mrb[19].mxu1 }
 0x139   :  { %2289 = vmatmul.mubr.bf16.gmra.mrb[84].mxu0 %v3891_v56  ;;  %3477 = vmatmul.mubr.msk.bf16.gmra.mrb[124].mxu1 %vm1633_vm1, %v3892_v57  ;;  %v3923_v56 = vld [vmem:[%s5327_s0 + $0x46c] ss:$20 sps:$4 sm:$0xff]   ;;  %v3925_v57 = vld [vmem:[%s5327_s0 + $0x330] ss:$20 sps:$4 sm:$0xff]  }
 0x13a   :  { %2296 = vmatprep.mubr.bf16.mxu0 %v3893_v60  ;;  %3480 = vmatprep.mubr.msk.bf16.mxu1 %vm1633_vm1, %v3895_v61 }
 0x13c   :  { %v4564_v63 = vpop.f32.mrb[20].mxu1 }
 0x13d   :  { %v1908_v3 = vpop.f32.mrb[21].mxu1 }
 0x13e   :  { %v4572_v4 = vpop.f32.mrb[22].mxu1  ;;  %v3927_v3 = vld [vmem:[%s5327_s0 + $0x358] ss:$20 sps:$4 sm:$0xff]  }
 0x13f   :  { %v1911_v7 = vpop.f32.mrb[23].mxu1 }
 0x141   :  { %2297 = vmatmul.mubr.bf16.gmra.mrb[88].mxu0 %v3896_v1  ;;  %3481 = vmatmul.mubr.msk.bf16.gmra.mrb[128].mxu1 %vm1633_vm1, %v3897_v2  ;;  %v3926_v2 = vld [vmem:[%s5327_s0 + $0x468] ss:$20 sps:$4 sm:$0xff]  }
 0x142   :  { %2304 = vmatprep.mubr.bf16.mxu0 %v3898_v5  ;;  %3484 = vmatprep.mubr.msk.bf16.mxu1 %vm1633_vm1, %v3900_v6 }
 0x144   :  { %v4582_v8 = vpop.f32.mrb[24].mxu1 }
 0x145   :  { %v1916_v11 = vpop.f32.mrb[25].mxu1 }
 0x146   :  { %v4590_v12 = vpop.f32.mrb[26].mxu1 }
 0x147   :  { %v1919_v15 = vpop.f32.mrb[27].mxu1 }
 0x149   :  { %2305 = vmatmul.mubr.bf16.gmra.mrb[92].mxu0 %v3901_v9  ;;  %3485 = vmatmul.mubr.msk.bf16.gmra.mrb[132].mxu1 %vm1633_vm1, %v3902_v10  ;;  %v3928_v9 = vld [vmem:[%s5327_s0 + $0x494] ss:$20 sps:$4 sm:$0xff]  }
 0x14a   :  { %2312 = vmatprep.mubr.bf16.mxu0 %v3903_v13  ;;  %3488 = vmatprep.mubr.msk.bf16.mxu1 %vm1633_vm1, %v3905_v14  ;;  %v3930_v10 = vld [vmem:[%s5327_s0 + $0x380] ss:$20 sps:$4 sm:$0xff]  }
 0x14c   :  { %v4600_v0 = vpop.f32.mrb[28].mxu1 }
 0x14d   :  { %v1924_v18 = vpop.f32.mrb[29].mxu1 }
 0x14e   :  { %v4608_v19 = vpop.f32.mrb[30].mxu1  ;;  %v3932_v18 = vld [vmem:[%s5327_s0 + $0x3a8] ss:$20 sps:$4 sm:$0xff]  }
 0x14f   :  { %v1927_v22 = vpop.f32.mrb[31].mxu1 }
 0x151   :  { %2313 = vmatmul.mubr.bf16.gmra.mrb[96].mxu0 %v3906_v16  ;;  %3489 = vmatmul.mubr.msk.bf16.gmra.mrb[136].mxu1 %vm1633_vm1, %v3907_v17  ;;  %v3931_v17 = vld [vmem:[%s5327_s0 + $0x490] ss:$20 sps:$4 sm:$0xff]  }
 0x152   :  { %2320 = vmatprep.mubr.bf16.mxu0 %v3908_v20  ;;  %3492 = vmatprep.mubr.msk.bf16.mxu1 %vm1633_vm1, %v3910_v21 }
 0x154   :  { %v4618_v24 = vpop.f32.mrb[32].mxu1 }
 0x155   :  { %v1932_v28 = vpop.f32.mrb[33].mxu1 }
 0x156   :  { %v4626_v29 = vpop.f32.mrb[34].mxu1 }
 0x157   :  { %v1935_v33 = vpop.f32.mrb[35].mxu1 }
 0x159   :  { %2321 = vmatmul.mubr.bf16.gmra.mrb[100].mxu0 %v3911_v25  ;;  %3493 = vmatmul.mubr.msk.bf16.gmra.mrb[140].mxu1 %vm1633_vm1, %v3912_v26  ;;  %v3933_v25 = vld [vmem:[%s5327_s0 + $0x4bc] ss:$20 sps:$4 sm:$0xff]  }
 0x15a   :  { %2328 = vmatprep.mubr.bf16.mxu0 %v3913_v30  ;;  %3496 = vmatprep.mubr.msk.bf16.mxu1 %vm1633_vm1, %v3915_v32  ;;  %v3935_v26 = vld [vmem:[%s5327_s0 + $0x3d0] ss:$20 sps:$4 sm:$0xff]  }
 0x15c   :  { %v4636_v34 = vpop.f32.mrb[36].mxu1 }
 0x15d   :  { %v1940_v38 = vpop.f32.mrb[37].mxu1 }
 0x15e   :  { %v4644_v40 = vpop.f32.mrb[38].mxu1  ;;  %v3937_v38 = vld [vmem:[%s5327_s0 + $0x3f8] ss:$20 sps:$4 sm:$0xff]  }
 0x15f   :  { %v1943_v44 = vpop.f32.mrb[39].mxu1 }
 0x161   :  { %2329 = vmatmul.mubr.bf16.gmra.mrb[104].mxu0 %v3916_v36  ;;  %3497 = vmatmul.mubr.msk.bf16.gmra.mrb[144].mxu1 %vm1633_vm1, %v3917_v37  ;;  %v3936_v37 = vld [vmem:[%s5327_s0 + $0x4b8] ss:$20 sps:$4 sm:$0xff]  }
 0x162   :  { %2336 = vmatprep.mubr.bf16.mxu0 %v3918_v41  ;;  %3500 = vmatprep.mubr.msk.bf16.mxu1 %vm1633_vm1, %v3920_v42 }
 0x164   :  { %v4654_v45 = vpop.f32.mrb[0].mxu0  ;;  %v4656_v46 = vpop.f32.mrb[40].mxu1 }
 0x165   :  { %v2124_v48 = vpop.f32.mrb[1].mxu0  ;;  %v1948_v52 = vpop.f32.mrb[41].mxu1 }
 0x166   :  { %v4664_v53 = vpop.f32.mrb[2].mxu0  ;;  %v4666_v54 = vpop.f32.mrb[42].mxu1  ;;  %v3938_v48 = vld [vmem:[%s5327_s0 + $0x4e4] ss:$20 sps:$4 sm:$0xff]  }
 0x167   :  { %v2127_v58 = vpop.f32.mrb[3].mxu0  ;;  %v1951_v60 = vpop.f32.mrb[43].mxu1 }
 0x168   :  { %v3941_v60 = vld [vmem:[%s5327_s0 + $0x4e0] ss:$20 sps:$4 sm:$0xff]  }
 0x169   :  { %2337 = vmatmul.mubr.bf16.gmra.mrb[108].mxu0 %v3921_v49  ;;  %3501 = vmatmul.mubr.msk.bf16.gmra.mrb[148].mxu1 %vm1633_vm1, %v3922_v50  ;;  %v3940_v49 = vld [vmem:[%s5327_s0 + $0x420] ss:$20 sps:$4 sm:$0xff]  }
 0x16a   :  { %2344 = vmatprep.mubr.bf16.mxu0 %v3923_v56  ;;  %3504 = vmatprep.mubr.msk.bf16.mxu1 %vm1633_vm1, %v3925_v57 }
 0x16c   :  { %v4676_v61 = vpop.f32.mrb[4].mxu0  ;;  %v4678_v62 = vpop.f32.mrb[44].mxu1 }
 0x16d   :  { %v2132_v1 = vpop.f32.mrb[5].mxu0  ;;  %v1956_v5 = vpop.f32.mrb[45].mxu1 }
 0x16e   :  { %v4686_v6 = vpop.f32.mrb[6].mxu0  ;;  %v4688_v7 = vpop.f32.mrb[46].mxu1  ;;  %v3942_v1 = vld [vmem:[%s5327_s0 + $0x448] ss:$20 sps:$4 sm:$0xff]  }
 0x16f   :  { %v2135_v11 = vpop.f32.mrb[7].mxu0  ;;  %v1959_v13 = vpop.f32.mrb[47].mxu1 }
 0x171   :  { %2345 = vmatmul.mubr.bf16.gmra.mrb[112].mxu0 %v3926_v2  ;;  %3505 = vmatmul.mubr.msk.bf16.gmra.mrb[152].mxu1 %vm1633_vm1, %v3927_v3 }
 0x172   :  { %2352 = vmatprep.mubr.bf16.mxu0 %v3928_v9  ;;  %3508 = vmatprep.mubr.msk.bf16.mxu1 %vm1633_vm1, %v3930_v10  ;;  %v3943_v9 = vld [vmem:[%s5327_s0 + $0x50c] ss:$20 sps:$4 sm:$0xff]   ;;  %v3945_v10 = vld [vmem:[%s5327_s0 + $0x470] ss:$20 sps:$4 sm:$0xff]  }
 0x174   :  { %v4698_v14 = vpop.f32.mrb[8].mxu0  ;;  %v4700_v15 = vpop.f32.mrb[48].mxu1 }
 0x175   :  { %v2140_v16 = vpop.f32.mrb[9].mxu0  ;;  %v1964_v20 = vpop.f32.mrb[49].mxu1 }
 0x176   :  { %v4708_v21 = vpop.f32.mrb[10].mxu0  ;;  %v4710_v22 = vpop.f32.mrb[50].mxu1  ;;  %v3946_v20 = vld [vmem:[%s5327_s0 + $0x508] ss:$20 sps:$4 sm:$0xff]  }
 0x177   :  { %v2143_v28 = vpop.f32.mrb[11].mxu0  ;;  %v1967_v30 = vpop.f32.mrb[51].mxu1 }
 0x179   :  { %2353 = vmatmul.mubr.bf16.gmra.mrb[116].mxu0 %v3931_v17  ;;  %3509 = vmatmul.mubr.msk.bf16.gmra.mrb[156].mxu1 %vm1633_vm1, %v3932_v18 }
 0x17a   :  { %2360 = vmatprep.mubr.bf16.mxu0 %v3933_v25  ;;  %3512 = vmatprep.mubr.msk.bf16.mxu1 %vm1633_vm1, %v3935_v26  ;;  %v3947_v25 = vld [vmem:[%s5327_s0 + $0x498] ss:$20 sps:$4 sm:$0xff]  }
 0x17c   :  { %v4720_v32 = vpop.f32.mrb[12].mxu0  ;;  %v4722_v33 = vpop.f32.mrb[52].mxu1 }
 0x17d   :  { %v2148_v36 = vpop.f32.mrb[13].mxu0  ;;  %v1972_v41 = vpop.f32.mrb[53].mxu1 }
 0x17e   :  { %v4730_v42 = vpop.f32.mrb[14].mxu0  ;;  %v4732_v44 = vpop.f32.mrb[54].mxu1  ;;  %v3948_v36 = vld [vmem:[%s5327_s0 + $0x534] ss:$20 sps:$4 sm:$0xff]  }
 0x17f   :  { %v2151_v50 = vpop.f32.mrb[15].mxu0  ;;  %v1975_v52 = vpop.f32.mrb[55].mxu1 }
 0x180   :  { %v3951_v52 = vld [vmem:[%s5327_s0 + $0x530] ss:$20 sps:$4 sm:$0xff]  }
 0x181   :  { %2361 = vmatmul.mubr.bf16.gmra.mrb[120].mxu0 %v3936_v37  ;;  %3513 = vmatmul.mubr.msk.bf16.gmra.mrb[160].mxu1 %vm1633_vm1, %v3937_v38  ;;  %v3950_v37 = vld [vmem:[%s5327_s0 + $0x4c0] ss:$20 sps:$4 sm:$0xff]  }
 0x182   :  { %2368 = vmatprep.mubr.bf16.mxu0 %v3938_v48  ;;  %3516 = vmatprep.mubr.msk.bf16.mxu1 %vm1633_vm1, %v3940_v49 }
 0x184   :  { %v4742_v56 = vpop.f32.mrb[16].mxu0  ;;  %v4744_v57 = vpop.f32.mrb[56].mxu1 }
 0x185   :  { %v2156_v58 = vpop.f32.mrb[17].mxu0  ;;  %v1980_v2 = vpop.f32.mrb[57].mxu1 }
 0x186   :  { %v4752_v3 = vpop.f32.mrb[18].mxu0  ;;  %v4754_v5 = vpop.f32.mrb[58].mxu1  ;;  %v3952_v58 = vld [vmem:[%s5327_s0 + $0x4e8] ss:$20 sps:$4 sm:$0xff]  }
 0x187   :  { %5329 = vst [vmem:[#allocation3_spill] sm:$0xff] %v4754_v5  ;;  %v2159_v11 = vpop.f32.mrb[19].mxu0  ;;  %v1983_v13 = vpop.f32.mrb[59].mxu1 }
 0x189   :  { %2369 = vmatmul.mubr.bf16.gmra.mrb[124].mxu0 %v3941_v60  ;;  %3517 = vmatmul.mubr.msk.bf16.gmra.mrb[164].mxu1 %vm1633_vm1, %v3942_v1 }
 0x18a   :  { %2376 = vmatprep.mubr.bf16.mxu0 %v3943_v9  ;;  %3520 = vmatprep.mubr.msk.bf16.mxu1 %vm1633_vm1, %v3945_v10  ;;  %v3953_v9 = vld [vmem:[%s5327_s0 + $0x55c] ss:$20 sps:$4 sm:$0xff]  }
 0x18b   :  { %v3955_v10 = vld [vmem:[%s5327_s0 + $0x510] ss:$20 sps:$4 sm:$0xff]  }
 0x18c   :  { %v4764_v16 = vpop.f32.mrb[20].mxu0  ;;  %v4766_v17 = vpop.f32.mrb[60].mxu1 }
 0x18d   :  { %5330 = vst [vmem:[#allocation4_spill] sm:$0xff] %v4766_v17  ;;  %v2164_v18 = vpop.f32.mrb[21].mxu0  ;;  %v1988_v26 = vpop.f32.mrb[61].mxu1 }
 0x18e   :  { %v4774_v28 = vpop.f32.mrb[22].mxu0  ;;  %v4776_v30 = vpop.f32.mrb[62].mxu1  ;;  %v3956_v26 = vld [vmem:[%s5327_s0 + $0x558] ss:$20 sps:$4 sm:$0xff]  }
 0x18f   :  { %5331 = vst [vmem:[#allocation5_spill] sm:$0xff] %v4776_v30  ;;  %v2167_v38 = vpop.f32.mrb[23].mxu0  ;;  %v1991_v41 = vpop.f32.mrb[63].mxu1 }
 0x191   :  { %2377 = vmatmul.mubr.bf16.gmra.mrb[128].mxu0 %v3946_v20  ;;  %3521 = vmatmul.mubr.msk.bf16.gmra.mrb[168].mxu1 %vm1633_vm1, %v3947_v25 }
 0x192   :  { %2384 = vmatprep.mubr.bf16.mxu0 %v3948_v36  ;;  %3524 = vmatprep.mubr.msk.bf16.mxu1 %vm1633_vm1, %v3950_v37  ;;  %v3957_v36 = vld [vmem:[%s5327_s0 + $0x538] ss:$20 sps:$4 sm:$0xff]  }
 0x194   :  { %v4786_v48 = vpop.f32.mrb[24].mxu0  ;;  %v4788_v49 = vpop.f32.mrb[64].mxu1 }
 0x195   :  { %5332 = vst [vmem:[#allocation6_spill] sm:$0xff] %v4788_v49  ;;  %v2172_v50 = vpop.f32.mrb[25].mxu0  ;;  %v1996_v60 = vpop.f32.mrb[65].mxu1 }
 0x196   :  { %v4796_v1 = vpop.f32.mrb[26].mxu0  ;;  %v4798_v2 = vpop.f32.mrb[66].mxu1  ;;  %v3958_v50 = vld [vmem:[%s5327_s0 + $0x584] ss:$20 sps:$4 sm:$0xff]  }
 0x197   :  { %5333 = vst [vmem:[#allocation7_spill] sm:$0xff] %v4798_v2  ;;  %v2175_v11 = vpop.f32.mrb[27].mxu0  ;;  %v1999_v13 = vpop.f32.mrb[67].mxu1 }
 0x198   :  { %v3961_v13 = vld [vmem:[%s5327_s0 + $0x580] ss:$20 sps:$4 sm:$0xff]  }
 0x199   :  { %2385 = vmatmul.mubr.bf16.gmra.mrb[132].mxu0 %v3951_v52  ;;  %3525 = vmatmul.mubr.msk.bf16.gmra.mrb[172].mxu1 %vm1633_vm1, %v3952_v58  ;;  %v3960_v52 = vld [vmem:[%s5327_s0 + $0x560] ss:$20 sps:$4 sm:$0xff]  }
 0x19a   :  { %2392 = vmatprep.mubr.bf16.mxu0 %v3953_v9  ;;  %3528 = vmatprep.mubr.msk.bf16.mxu1 %vm1633_vm1, %v3955_v10 }
 0x19c   :  { %v4808_v18 = vpop.f32.mrb[28].mxu0  ;;  %v4810_v20 = vpop.f32.mrb[68].mxu1 }
 0x19d   :  { %5334 = vst [vmem:[#allocation8_spill] sm:$0xff] %v4810_v20  ;;  %v2180_v25 = vpop.f32.mrb[29].mxu0  ;;  %v2004_v37 = vpop.f32.mrb[69].mxu1 }
 0x19e   :  { %v4818_v38 = vpop.f32.mrb[30].mxu0  ;;  %v4820_v41 = vpop.f32.mrb[70].mxu1  ;;  %v3962_v25 = vld [vmem:[%s5327_s0 + $0x588] ss:$20 sps:$4 sm:$0xff]  }
 0x19f   :  { %5335 = vst [vmem:[#allocation9_spill] sm:$0xff] %v4820_v41  ;;  %v2183_v58 = vpop.f32.mrb[31].mxu0  ;;  %v2007_v60 = vpop.f32.mrb[71].mxu1 }
 0x1a1   :  { %2393 = vmatmul.mubr.bf16.gmra.mrb[136].mxu0 %v3956_v26  ;;  %3529 = vmatmul.mubr.msk.bf16.gmra.mrb[176].mxu1 %vm1633_vm1, %v3957_v36 }
 0x1a2   :  { %2400 = vmatprep.mubr.bf16.mxu0 %v3958_v50  ;;  %3532 = vmatprep.mubr.msk.bf16.mxu1 %vm1633_vm1, %v3960_v52  ;;  %v3963_v50 = vld [vmem:[%s5327_s0 + $0x5ac] ss:$20 sps:$4 sm:$0xff]   ;;  %v3966_v52 = vld [vmem:[%s5327_s0 + $0x5b0] ss:$20 sps:$4 sm:$0xff]  }
 0x1a4   :  { %v4830_v9 = vpop.f32.mrb[32].mxu0  ;;  %v4832_v10 = vpop.f32.mrb[72].mxu1 }
 0x1a5   :  { %5336 = vst [vmem:[#allocation10_spill] sm:$0xff] %v4832_v10  ;;  %v2188_v11 = vpop.f32.mrb[33].mxu0  ;;  %v2012_v37 = vpop.f32.mrb[73].mxu1 }
 0x1a6   :  { %v4840_v26 = vpop.f32.mrb[34].mxu0  ;;  %v4842_v36 = vpop.f32.mrb[74].mxu1  ;;  %v314_v11 = vld [vmem:[%s5327_s0 + $0x5d0] sm:$0xff] }
 0x1a7   :  { %5337 = vst [vmem:[#allocation11_spill] sm:$0xff] %v4842_v36  ;;  %v2191_v58 = vpop.f32.mrb[35].mxu0  ;;  %v2015_v60 = vpop.f32.mrb[75].mxu1  ;;  %v3329_v49 = vcombine.low %v314_v11, %v314_v11 }
 0x1a8   :  { %v3965_v58 = vld [vmem:[%s5327_s0 + $0x5a8] ss:$20 sps:$4 sm:$0xff]  }
 0x1a9   :  { %2401 = vmatmul.mubr.bf16.gmra.mrb[140].mxu0 %v3961_v13  ;;  %3533 = vmatmul.mubr.msk.bf16.gmra.mrb[180].mxu1 %vm1633_vm1, %v3962_v25  ;;  %v3967_v13 = vld [vmem:[%s5327_s0 + $0x5d8] ss:$0 sps:$4 sm:$0xff]  }
 0x1aa   :  { %2408 = vmatprep.mubr.bf16.mxu0 %v3963_v50  ;;  %3536 = vmatprep.mubr.msk.bf16.mxu1 %vm1633_vm1, %v3966_v52  ;;  %v3330_v52 = vcombine.high %v314_v11, %v314_v11 }
 0x1ac   :  { %v4855_v37 = vpop.f32.mrb[36].mxu0  ;;  %v4857_v36 = vpop.f32.mrb[76].mxu1 }
 0x1ad   :  { %5338 = vst [vmem:[#allocation12_spill] sm:$0xff] %v4857_v36  ;;  %v2196_v10 = vpop.f32.mrb[37].mxu0  ;;  %v2020_v60 = vpop.f32.mrb[77].mxu1 }
 0x1ae   :  { %v4865_v25 = vpop.f32.mrb[38].mxu0  ;;  %v4867_v50 = vpop.f32.mrb[78].mxu1 }
 0x1af   :  { %5339 = vst [vmem:[#allocation13_spill] sm:$0xff] %v4867_v50  ;;  %v2199_v41 = vpop.f32.mrb[39].mxu0  ;;  %v2023_v20 = vpop.f32.mrb[79].mxu1 }
 0x1b1   :  { %2409 = vmatmul.mubr.bf16.gmra.mrb[144].mxu0 %v3965_v58  ;;  %3537 = vmatmul.mubr.msk.bf16.gmra.mrb[184].mxu1 %vm1633_vm1, %v3967_v13 }
 0x1b2   :  { %2416 = vmatprep.mubr.bf16.mxu0 %v3330_v52 }
 0x1b4   :  { %v2202_v10 = vpop.f32.mrb[40].mxu0  ;;  %v4870_v36 = vpop.f32.mrb[80].mxu1 }
 0x1b5   :  { %5340 = vst [vmem:[#allocation14_spill] sm:$0xff] %v4870_v36  ;;  %v4873_v60 = vadd.f32 %v2202_v10, %v4478_v23  ;;  %v2204_v2 = vpop.f32.mrb[41].mxu0  ;;  %v2028_v30 = vpop.f32.mrb[81].mxu1 }
 0x1b6   :  { %v2205_v17 = vpop.f32.mrb[42].mxu0  ;;  %v4875_v5 = vpop.f32.mrb[82].mxu1 }
 0x1b7   :  { %5341 = vst [vmem:[#allocation15_spill] sm:$0xff] %v4875_v5  ;;  %v4878_v50 = vadd.f32 %v2205_v17, %v4483_v27  ;;  %v2207_v20 = vpop.f32.mrb[43].mxu0  ;;  %v2031_v41 = vpop.f32.mrb[83].mxu1 }
 0x1b9   :  { %2417 = vmatmul.mubr.bf16.gmra.mrb[148].mxu0 %v3329_v49 }
 0x1bc   :  { %v2210_v58 = vpop.f32.mrb[44].mxu0  ;;  %v4880_v13 = vpop.f32.mrb[84].mxu1 }
 0x1bd   :  { %5342 = vst [vmem:[#allocation16_spill] sm:$0xff] %v4880_v13  ;;  %v4883_v52 = vadd.f32 %v2210_v58, %v4492_v31  ;;  %v2212_v23 = vpop.f32.mrb[45].mxu0  ;;  %v2036_v10 = vpop.f32.mrb[85].mxu1 }
 0x1be   :  { %v2213_v2 = vpop.f32.mrb[46].mxu0  ;;  %v4885_v11 = vpop.f32.mrb[86].mxu1 }
 0x1bf   :  { %5343 = vst [vmem:[#allocation17_spill] sm:$0xff] %v4885_v11  ;;  %v4888_v30 = vadd.f32 %v2213_v2, %v4500_v35  ;;  %v2215_v5 = vpop.f32.mrb[47].mxu0  ;;  %v2039_v27 = vpop.f32.mrb[87].mxu1 }
 0x1c4   :  { %v2218_v17 = vpop.f32.mrb[48].mxu0  ;;  %v4890_v20 = vpop.f32.mrb[88].mxu1 }
 0x1c5   :  { %5344 = vst [vmem:[#allocation18_spill] sm:$0xff] %v4890_v20  ;;  %v4893_v49 = vadd.f32 %v2218_v17, %v4510_v39  ;;  %v2220_v41 = vpop.f32.mrb[49].mxu0  ;;  %v2044_v13 = vpop.f32.mrb[89].mxu1 }
 0x1c6   :  { %v2221_v31 = vpop.f32.mrb[50].mxu0  ;;  %v4895_v58 = vpop.f32.mrb[90].mxu1 }
 0x1c7   :  { %5345 = vst [vmem:[#allocation19_spill] sm:$0xff] %v4895_v58  ;;  %v4898_v23 = vadd.f32 %v2221_v31, %v4518_v43  ;;  %v2223_v10 = vpop.f32.mrb[51].mxu0  ;;  %v2047_v11 = vpop.f32.mrb[91].mxu1 }
 0x1cc   :  { %v2226_v35 = vpop.f32.mrb[52].mxu0  ;;  %v4900_v2 = vpop.f32.mrb[92].mxu1 }
 0x1cd   :  { %5346 = vst [vmem:[#allocation20_spill] sm:$0xff] %v4900_v2  ;;  %v4903_v5 = vadd.f32 %v2226_v35, %v4528_v47  ;;  %v2228_v27 = vpop.f32.mrb[53].mxu0  ;;  %v2052_v20 = vpop.f32.mrb[93].mxu1 }
 0x1ce   :  { %v2229_v39 = vpop.f32.mrb[54].mxu0  ;;  %v4905_v17 = vpop.f32.mrb[94].mxu1 }
 0x1cf   :  { %5347 = vst [vmem:[#allocation21_spill] sm:$0xff] %v4905_v17  ;;  %v4908_v13 = vadd.f32 %v2229_v39, %v4536_v51  ;;  %v2231_v41 = vpop.f32.mrb[55].mxu0  ;;  %v2055_v58 = vpop.f32.mrb[95].mxu1 }
 0x1d4   :  { %v2234_v43 = vpop.f32.mrb[56].mxu0  ;;  %v4910_v31 = vpop.f32.mrb[96].mxu1 }
 0x1d5   :  { %5348 = vst [vmem:[#allocation22_spill] sm:$0xff] %v4910_v31  ;;  %v4913_v11 = vadd.f32 %v2234_v43, %v4546_v55  ;;  %v2236_v10 = vpop.f32.mrb[57].mxu0  ;;  %v2060_v2 = vpop.f32.mrb[97].mxu1 }
 0x1d6   :  { %v2237_v47 = vpop.f32.mrb[58].mxu0  ;;  %v4915_v35 = vpop.f32.mrb[98].mxu1 }
 0x1d7   :  { %5349 = vst [vmem:[#allocation23_spill] sm:$0xff] %v4915_v35  ;;  %v4918_v20 = vadd.f32 %v2237_v47, %v4554_v59  ;;  %v2239_v27 = vpop.f32.mrb[59].mxu0  ;;  %v2063_v17 = vpop.f32.mrb[99].mxu1 }
 0x1dc   :  { %v2242_v51 = vpop.f32.mrb[60].mxu0  ;;  %v4920_v39 = vpop.f32.mrb[100].mxu1 }
 0x1dd   :  { %5350 = vst [vmem:[#allocation24_spill] sm:$0xff] %v4920_v39  ;;  %v4923_v58 = vadd.f32 %v2242_v51, %v4564_v63  ;;  %v2244_v41 = vpop.f32.mrb[61].mxu0  ;;  %v2068_v31 = vpop.f32.mrb[101].mxu1 }
 0x1de   :  { %v2245_v55 = vpop.f32.mrb[62].mxu0  ;;  %v4925_v43 = vpop.f32.mrb[102].mxu1 }
 0x1df   :  { %5351 = vst [vmem:[#allocation25_spill] sm:$0xff] %v4925_v43  ;;  %v4928_v2 = vadd.f32 %v2245_v55, %v4572_v4  ;;  %v2247_v10 = vpop.f32.mrb[63].mxu0  ;;  %v2071_v35 = vpop.f32.mrb[103].mxu1 }
 0x1e4   :  { %v2250_v59 = vpop.f32.mrb[64].mxu0  ;;  %v4930_v47 = vpop.f32.mrb[104].mxu1 }
 0x1e5   :  { %5352 = vst [vmem:[#allocation26_spill] sm:$0xff] %v4930_v47  ;;  %v4933_v17 = vadd.f32 %v2250_v59, %v4582_v8  ;;  %v2252_v27 = vpop.f32.mrb[65].mxu0  ;;  %v2076_v39 = vpop.f32.mrb[105].mxu1 }
 0x1e6   :  { %v2253_v63 = vpop.f32.mrb[66].mxu0  ;;  %v4935_v51 = vpop.f32.mrb[106].mxu1 }
 0x1e7   :  { %5353 = vst [vmem:[#allocation27_spill] sm:$0xff] %v4935_v51  ;;  %v4938_v31 = vadd.f32 %v2253_v63, %v4590_v12  ;;  %v2255_v41 = vpop.f32.mrb[67].mxu0  ;;  %v2079_v43 = vpop.f32.mrb[107].mxu1 }
 0x1ec   :  { %v2258_v4 = vpop.f32.mrb[68].mxu0  ;;  %v4940_v55 = vpop.f32.mrb[108].mxu1 }
 0x1ed   :  { %5354 = vst [vmem:[#allocation28_spill] sm:$0xff] %v4940_v55  ;;  %v4943_v35 = vadd.f32 %v2258_v4, %v4600_v0  ;;  %v2260_v10 = vpop.f32.mrb[69].mxu0  ;;  %v2084_v47 = vpop.f32.mrb[109].mxu1 }
 0x1ee   :  { %v2261_v8 = vpop.f32.mrb[70].mxu0  ;;  %v2085_v59 = vpop.f32.mrb[110].mxu1 }
 0x1ef   :  { %v4946_v39 = vadd.f32 %v2261_v8, %v4608_v19  ;;  %v2263_v27 = vpop.f32.mrb[71].mxu0  ;;  %v2086_v51 = vpop.f32.mrb[111].mxu1 }
 0x1f4   :  { %v2266_v36 = vpop.f32.mrb[72].mxu0  ;;  %v3466_v12 = vpop.f32.mrb[112].mxu1 }
 0x1f5   :  { %v4949_v63 = vadd.f32 %v2266_v36, %v4618_v24  ;;  %v2467_v43 = vadd.f32 %v3466_v12, %v4676_v61  ;;  %v2268_v41 = vpop.f32.mrb[73].mxu0  ;;  %v2458_v55 = vpop.f32.mrb[113].mxu1 }
 0x1f6   :  { %v2459_v0 = vadd.f32 %v2458_v55, %v4654_v45  ;;  %v2269_v4 = vpop.f32.mrb[74].mxu0  ;;  %v3467_v47 = vpop.f32.mrb[114].mxu1 }
 0x1f7   :  { %v2990_v10 = vmax.f32 %v2467_v43, 0.0  ;;  %v4954_v59 = vadd.f32 %v2269_v4, %v4626_v29  ;;  %v2470_v19 = vadd.f32 %v3467_v47, %v4686_v6  ;;  %v2271_v51 = vpop.f32.mrb[75].mxu0  ;;  %v2461_v8 = vpop.f32.mrb[115].mxu1 }
 0x1f8   :  { %v2988_v27 = vmax.f32 %v2459_v0, 0.0  ;;  %v2462_v24 = vadd.f32 %v2461_v8, %v4664_v53 }
 0x1f9   :  { %3065 = vst [vmem:[%s5328_s2 + $0x10] sm:$0xff] %v2990_v10  ;;  %v2991_v61 = vmax.f32 %v2470_v19, 0.0 }
 0x1fa   :  { %3063 = vst [vmem:[%s5328_s2] sm:$0xff] %v2988_v27  ;;  %v2989_v45 = vmax.f32 %v2462_v24, 0.0 }
 0x1fb   :  { %3066 = vst [vmem:[%s5328_s2 + $0x18] sm:$0xff] %v2991_v61 }
 0x1fc   :  { %3064 = vst [vmem:[%s5328_s2 + $0x8] sm:$0xff] %v2989_v45  ;;  %v2274_v29 = vpop.f32.mrb[76].mxu0  ;;  %v3470_v53 = vpop.f32.mrb[116].mxu1 }
 0x1fd   :  { %v4971_v6 = vadd.f32 %v2274_v29, %v4636_v34  ;;  %v2483_v36 = vadd.f32 %v3470_v53, %v4720_v32  ;;  %v2276_v55 = vpop.f32.mrb[77].mxu0  ;;  %v2474_v12 = vpop.f32.mrb[117].mxu1 }
 0x1fe   :  { %v2475_v43 = vadd.f32 %v2474_v12, %v4698_v14  ;;  %v2277_v41 = vpop.f32.mrb[78].mxu0  ;;  %v3471_v0 = vpop.f32.mrb[118].mxu1 }
 0x1ff   :  { %v2994_v4 = vmax.f32 %v2483_v36, 0.0  ;;  %v4976_v47 = vadd.f32 %v2277_v41, %v4644_v40  ;;  %v2486_v10 = vadd.f32 %v3471_v0, %v4730_v42  ;;  %v2279_v19 = vpop.f32.mrb[79].mxu0  ;;  %v2477_v51 = vpop.f32.mrb[119].mxu1 }
 0x200   :  { %v2992_v8 = vmax.f32 %v2475_v43, 0.0  ;;  %v2478_v34 = vadd.f32 %v2477_v51, %v4708_v21 }
 0x201   :  { %3069 = vst [vmem:[%s5328_s2 + $0x30] sm:$0xff] %v2994_v4  ;;  %v2995_v32 = vmax.f32 %v2486_v10, 0.0 }
 0x202   :  { %3067 = vst [vmem:[%s5328_s2 + $0x20] sm:$0xff] %v2992_v8  ;;  %v2993_v14 = vmax.f32 %v2478_v34, 0.0 }
 0x203   :  { %3070 = vst [vmem:[%s5328_s2 + $0x38] sm:$0xff] %v2995_v32 }
 0x204   :  { %3068 = vst [vmem:[%s5328_s2 + $0x28] sm:$0xff] %v2993_v14  ;;  %v2282_v40 = vpop.f32.mrb[80].mxu0  ;;  %v3474_v21 = vpop.f32.mrb[120].mxu1 }
 0x205   :  { %v4993_v42 = vadd.f32 %v2282_v40, %v4656_v46  ;;  %v2499_v27 = vadd.f32 %v3474_v21, %v4764_v16  ;;  %v2284_v24 = vpop.f32.mrb[81].mxu0  ;;  %v2490_v61 = vpop.f32.mrb[121].mxu1 }
 0x206   :  { %v2491_v45 = vadd.f32 %v2490_v61, %v4742_v56  ;;  %v2285_v29 = vpop.f32.mrb[82].mxu0  ;;  %v3475_v53 = vpop.f32.mrb[122].mxu1 }
 0x207   :  { %v2998_v36 = vmax.f32 %v2499_v27, 0.0  ;;  %v4998_v55 = vadd.f32 %v2285_v29, %v4666_v54  ;;  %v2502_v12 = vadd.f32 %v3475_v53, %v4774_v28  ;;  %v2287_v43 = vpop.f32.mrb[83].mxu0  ;;  %v2493_v41 = vpop.f32.mrb[123].mxu1 }
 0x208   :  { %v2996_v0 = vmax.f32 %v2491_v45, 0.0  ;;  %v2494_v46 = vadd.f32 %v2493_v41, %v4752_v3 }
 0x209   :  { %3073 = vst [vmem:[%s5328_s2 + $0x50] sm:$0xff] %v2998_v36  ;;  %v2999_v16 = vmax.f32 %v2502_v12, 0.0 }
 0x20a   :  { %3071 = vst [vmem:[%s5328_s2 + $0x40] sm:$0xff] %v2996_v0  ;;  %v2997_v56 = vmax.f32 %v2494_v46, 0.0 }
 0x20b   :  { %3074 = vst [vmem:[%s5328_s2 + $0x58] sm:$0xff] %v2999_v16 }
 0x20c   :  { %3072 = vst [vmem:[%s5328_s2 + $0x48] sm:$0xff] %v2997_v56  ;;  %v2290_v54 = vpop.f32.mrb[84].mxu0  ;;  %v3478_v3 = vpop.f32.mrb[124].mxu1 }
 0x20d   :  { %v5015_v28 = vadd.f32 %v2290_v54, %v4678_v62  ;;  %v2515_v4 = vadd.f32 %v3478_v3, %v4808_v18  ;;  %v2292_v10 = vpop.f32.mrb[85].mxu0  ;;  %v2506_v19 = vpop.f32.mrb[125].mxu1 }
 0x20e   :  { %v2507_v51 = vadd.f32 %v2506_v19, %v4786_v48  ;;  %v2293_v8 = vpop.f32.mrb[86].mxu0  ;;  %v3479_v34 = vpop.f32.mrb[126].mxu1 }
 0x20f   :  { %v3002_v32 = vmax.f32 %v2515_v4, 0.0  ;;  %v5020_v14 = vadd.f32 %v2293_v8, %v4688_v7  ;;  %v2518_v40 = vadd.f32 %v3479_v34, %v4818_v38  ;;  %v2295_v21 = vpop.f32.mrb[87].mxu0  ;;  %v2509_v27 = vpop.f32.mrb[127].mxu1 }
 0x210   :  { %v3000_v24 = vmax.f32 %v2507_v51, 0.0  ;;  %v2510_v62 = vadd.f32 %v2509_v27, %v4796_v1 }
 0x211   :  { %3077 = vst [vmem:[%s5328_s2 + $0x70] sm:$0xff] %v3002_v32  ;;  %v3003_v18 = vmax.f32 %v2518_v40, 0.0 }
 0x212   :  { %3075 = vst [vmem:[%s5328_s2 + $0x60] sm:$0xff] %v3000_v24  ;;  %v3001_v48 = vmax.f32 %v2510_v62, 0.0 }
 0x213   :  { %3078 = vst [vmem:[%s5328_s2 + $0x78] sm:$0xff] %v3003_v18 }
 0x214   :  { %3076 = vst [vmem:[%s5328_s2 + $0x68] sm:$0xff] %v3001_v48  ;;  %v2298_v7 = vpop.f32.mrb[88].mxu0  ;;  %v3482_v1 = vpop.f32.mrb[128].mxu1 }
 0x215   :  { %v5037_v38 = vadd.f32 %v2298_v7, %v4700_v15  ;;  %v2531_v61 = vadd.f32 %v3482_v1, %v4855_v37  ;;  %v2300_v45 = vpop.f32.mrb[89].mxu0  ;;  %v2522_v29 = vpop.f32.mrb[129].mxu1 }
 0x216   :  { %v2523_v53 = vadd.f32 %v2522_v29, %v4830_v9  ;;  %v2301_v36 = vpop.f32.mrb[90].mxu0  ;;  %v3483_v12 = vpop.f32.mrb[130].mxu1  ;;  %v5355_v45 = vld [vmem:[#allocation3_spill] sm:$0xff] }
 0x217   :  { %v3006_v43 = vmax.f32 %v2531_v61, 0.0  ;;  %v5042_v41 = vadd.f32 %v2301_v36, %v4710_v22  ;;  %v2534_v0 = vadd.f32 %v3483_v12, %v4865_v25  ;;  %v2303_v46 = vpop.f32.mrb[91].mxu0  ;;  %v2525_v16 = vpop.f32.mrb[131].mxu1 }
 0x218   :  { %v3004_v56 = vmax.f32 %v2523_v53, 0.0  ;;  %v2526_v15 = vadd.f32 %v2525_v16, %v4840_v26 }
 0x219   :  { %3081 = vst [vmem:[%s5328_s2 + $0x90] sm:$0xff] %v3006_v43  ;;  %v3007_v37 = vmax.f32 %v2534_v0, 0.0  ;;  %v5356_v0 = vld [vmem:[#allocation4_spill] sm:$0xff] }
 0x21a   :  { %3079 = vst [vmem:[%s5328_s2 + $0x80] sm:$0xff] %v3004_v56  ;;  %v3005_v9 = vmax.f32 %v2526_v15, 0.0 }
 0x21b   :  { %3082 = vst [vmem:[%s5328_s2 + $0x98] sm:$0xff] %v3007_v37 }
 0x21c   :  { %3080 = vst [vmem:[%s5328_s2 + $0x88] sm:$0xff] %v3005_v9  ;;  %v2306_v22 = vpop.f32.mrb[92].mxu0  ;;  %v3486_v26 = vpop.f32.mrb[132].mxu1 }
 0x21d   :  { %v5059_v25 = vadd.f32 %v2306_v22, %v4722_v33  ;;  %v2547_v54 = vadd.f32 %v3486_v26, %v4883_v52  ;;  %v2308_v3 = vpop.f32.mrb[93].mxu0  ;;  %v2538_v4 = vpop.f32.mrb[133].mxu1 }
 0x21e   :  { %v2539_v10 = vadd.f32 %v2538_v4, %v4873_v60  ;;  %v2309_v19 = vpop.f32.mrb[94].mxu0  ;;  %v3487_v51 = vpop.f32.mrb[134].mxu1 }
 0x21f   :  { %v3010_v8 = vmax.f32 %v2547_v54, 0.0  ;;  %v5064_v34 = vadd.f32 %v2309_v19, %v4732_v44  ;;  %v2550_v32 = vadd.f32 %v3487_v51, %v4888_v30  ;;  %v2311_v40 = vpop.f32.mrb[95].mxu0  ;;  %v2541_v21 = vpop.f32.mrb[135].mxu1  ;;  %v5357_v54 = vld [vmem:[#allocation5_spill] sm:$0xff] }
 0x220   :  { %v3008_v27 = vmax.f32 %v2539_v10, 0.0  ;;  %v2542_v33 = vadd.f32 %v2541_v21, %v4878_v50 }
 0x221   :  { %3085 = vst [vmem:[%s5328_s2 + $0xb0] sm:$0xff] %v3010_v8  ;;  %v3011_v52 = vmax.f32 %v2550_v32, 0.0  ;;  %v5358_v32 = vld [vmem:[#allocation6_spill] sm:$0xff] }
 0x222   :  { %3083 = vst [vmem:[%s5328_s2 + $0xa0] sm:$0xff] %v3008_v27  ;;  %v3009_v60 = vmax.f32 %v2542_v33, 0.0 }
 0x223   :  { %3086 = vst [vmem:[%s5328_s2 + $0xb8] sm:$0xff] %v3011_v52 }
 0x224   :  { %3084 = vst [vmem:[%s5328_s2 + $0xa8] sm:$0xff] %v3009_v60  ;;  %v2314_v44 = vpop.f32.mrb[96].mxu0  ;;  %v3490_v50 = vpop.f32.mrb[136].mxu1 }
 0x225   :  { %v5081_v30 = vadd.f32 %v2314_v44, %v4744_v57  ;;  %v2563_v24 = vadd.f32 %v3490_v50, %v4903_v5  ;;  %v2316_v62 = vpop.f32.mrb[97].mxu0  ;;  %v2554_v18 = vpop.f32.mrb[137].mxu1 }
 0x226   :  { %v2555_v48 = vadd.f32 %v2554_v18, %v4893_v49  ;;  %v2317_v7 = vpop.f32.mrb[98].mxu0  ;;  %v3491_v1 = vpop.f32.mrb[138].mxu1 }
 0x227   :  { %v3014_v61 = vmax.f32 %v2563_v24, 0.0  ;;  %v5086_v29 = vadd.f32 %v2317_v7, %v5355_v45  ;;  %v2566_v53 = vadd.f32 %v3491_v1, %v4908_v13  ;;  %v2319_v36 = vpop.f32.mrb[99].mxu0  ;;  %v2557_v12 = vpop.f32.mrb[139].mxu1  ;;  %v5359_v24 = vld [vmem:[#allocation7_spill] sm:$0xff]  ;;  %v5360_v45 = vld [vmem:[#allocation8_spill] sm:$0xff] }
 0x228   :  { %v3012_v43 = vmax.f32 %v2555_v48, 0.0  ;;  %v2558_v57 = vadd.f32 %v2557_v12, %v4898_v23 }
 0x229   :  { %3089 = vst [vmem:[%s5328_s2 + $0xd0] sm:$0xff] %v3014_v61  ;;  %v3015_v5 = vmax.f32 %v2566_v53, 0.0 }
 0x22a   :  { %3087 = vst [vmem:[%s5328_s2 + $0xc0] sm:$0xff] %v3012_v43  ;;  %v3013_v49 = vmax.f32 %v2558_v57, 0.0 }
 0x22b   :  { %3090 = vst [vmem:[%s5328_s2 + $0xd8] sm:$0xff] %v3015_v5 }
 0x22c   :  { %3088 = vst [vmem:[%s5328_s2 + $0xc8] sm:$0xff] %v3013_v49  ;;  %v2322_v13 = vpop.f32.mrb[100].mxu0  ;;  %v3494_v23 = vpop.f32.mrb[140].mxu1 }
 0x22d   :  { %v5103_v46 = vadd.f32 %v2322_v13, %v5356_v0  ;;  %v2579_v16 = vadd.f32 %v3494_v23, %v4923_v58  ;;  %v2324_v56 = vpop.f32.mrb[101].mxu0  ;;  %v2570_v15 = vpop.f32.mrb[141].mxu1  ;;  %v5361_v23 = vld [vmem:[#allocation9_spill] sm:$0xff] }
 0x22e   :  { %v2571_v37 = vadd.f32 %v2570_v15, %v4913_v11  ;;  %v2325_v9 = vpop.f32.mrb[102].mxu0  ;;  %v3495_v22 = vpop.f32.mrb[142].mxu1 }
 0x22f   :  { %v3018_v26 = vmax.f32 %v2579_v16, 0.0  ;;  %v5108_v3 = vadd.f32 %v2325_v9, %v5357_v54  ;;  %v2582_v4 = vadd.f32 %v3495_v22, %v4928_v2  ;;  %v2327_v10 = vpop.f32.mrb[103].mxu0  ;;  %v2573_v19 = vpop.f32.mrb[143].mxu1  ;;  %v5362_v22 = vld [vmem:[#allocation10_spill] sm:$0xff] }
 0x230   :  { %v3016_v51 = vmax.f32 %v2571_v37, 0.0  ;;  %v2574_v8 = vadd.f32 %v2573_v19, %v4918_v20 }
 0x231   :  { %3093 = vst [vmem:[%s5328_s2 + $0xf0] sm:$0xff] %v3018_v26  ;;  %v3019_v58 = vmax.f32 %v2582_v4, 0.0 }
 0x232   :  { %3091 = vst [vmem:[%s5328_s2 + $0xe0] sm:$0xff] %v3016_v51  ;;  %v3017_v11 = vmax.f32 %v2574_v8, 0.0 }
 0x233   :  { %3094 = vst [vmem:[%s5328_s2 + $0xf8] sm:$0xff] %v3019_v58 }
 0x234   :  { %3092 = vst [vmem:[%s5328_s2 + $0xe8] sm:$0xff] %v3017_v11  ;;  %v2330_v2 = vpop.f32.mrb[104].mxu0  ;;  %v3498_v20 = vpop.f32.mrb[144].mxu1  ;;  %v5363_v11 = vld [vmem:[#allocation11_spill] sm:$0xff] }
 0x235   :  { %v5125_v40 = vadd.f32 %v2330_v2, %v5358_v32  ;;  %v2595_v21 = vadd.f32 %v3498_v20, %v4943_v35  ;;  %v2332_v27 = vpop.f32.mrb[105].mxu0  ;;  %v2586_v33 = vpop.f32.mrb[145].mxu1 }
 0x236   :  { %v2587_v52 = vadd.f32 %v2586_v33, %v4933_v17  ;;  %v2333_v60 = vpop.f32.mrb[106].mxu0  ;;  %v3499_v44 = vpop.f32.mrb[146].mxu1 }
 0x237   :  { %v3022_v50 = vmax.f32 %v2595_v21, 0.0  ;;  %v5130_v62 = vadd.f32 %v2333_v60, %v5359_v24  ;;  %v2598_v18 = vadd.f32 %v3499_v44, %v4946_v39  ;;  %v2335_v48 = vpop.f32.mrb[107].mxu0  ;;  %v2589_v7 = vpop.f32.mrb[147].mxu1 }
 0x238   :  { %v3020_v1 = vmax.f32 %v2587_v52, 0.0  ;;  %v2590_v61 = vadd.f32 %v2589_v7, %v4938_v31  ;;  %v5364_v52 = vld [vmem:[#allocation12_spill] sm:$0xff] }
 0x239   :  { %3097 = vst [vmem:[%s5328_s2 + $0x110] sm:$0xff] %v3022_v50  ;;  %v3023_v35 = vmax.f32 %v2598_v18, 0.0 }
 0x23a   :  { %3095 = vst [vmem:[%s5328_s2 + $0x100] sm:$0xff] %v3020_v1  ;;  %v3021_v17 = vmax.f32 %v2590_v61, 0.0  ;;  %v5365_v61 = vld [vmem:[#allocation13_spill] sm:$0xff] }
 0x23b   :  { %3098 = vst [vmem:[%s5328_s2 + $0x118] sm:$0xff] %v3023_v35 }
 0x23c   :  { %3096 = vst [vmem:[%s5328_s2 + $0x108] sm:$0xff] %v3021_v17  ;;  %v2338_v39 = vpop.f32.mrb[108].mxu0  ;;  %v3502_v31 = vpop.f32.mrb[148].mxu1 }
 0x23d   :  { %v5147_v53 = vadd.f32 %v2338_v39, %v5360_v45  ;;  %v2611_v36 = vadd.f32 %v3502_v31, %v4971_v6  ;;  %v2340_v12 = vpop.f32.mrb[109].mxu0  ;;  %v2602_v43 = vpop.f32.mrb[149].mxu1 }
 0x23e   :  { %v2603_v57 = vadd.f32 %v2602_v43, %v4949_v63  ;;  %v2341_v5 = vpop.f32.mrb[110].mxu0  ;;  %v3503_v49 = vpop.f32.mrb[150].mxu1  ;;  %v5366_v12 = vld [vmem:[#allocation14_spill] sm:$0xff] }
 0x23f   :  { %v3026_v13 = vmax.f32 %v2611_v36, 0.0  ;;  %v5152_v0 = vadd.f32 %v2341_v5, %v5361_v23  ;;  %v2614_v16 = vadd.f32 %v3503_v49, %v4976_v47  ;;  %v2343_v56 = vpop.f32.mrb[111].mxu0  ;;  %v2605_v15 = vpop.f32.mrb[151].mxu1 }
 0x240   :  { %v3024_v37 = vmax.f32 %v2603_v57, 0.0  ;;  %v2606_v9 = vadd.f32 %v2605_v15, %v4954_v59  ;;  %v5367_v15 = vld [vmem:[#allocation15_spill] sm:$0xff] }
 0x241   :  { %3101 = vst [vmem:[%s5328_s2 + $0x130] sm:$0xff] %v3026_v13  ;;  %v3027_v6 = vmax.f32 %v2614_v16, 0.0 }
 0x242   :  { %3099 = vst [vmem:[%s5328_s2 + $0x120] sm:$0xff] %v3024_v37  ;;  %v3025_v63 = vmax.f32 %v2606_v9, 0.0 }
 0x243   :  { %3102 = vst [vmem:[%s5328_s2 + $0x138] sm:$0xff] %v3027_v6 }
 0x244   :  { %3100 = vst [vmem:[%s5328_s2 + $0x128] sm:$0xff] %v3025_v63  ;;  %v2346_v47 = vpop.f32.mrb[112].mxu0  ;;  %v3506_v59 = vpop.f32.mrb[152].mxu1 }
 0x245   :  { %v5169_v26 = vadd.f32 %v2346_v47, %v5362_v22  ;;  %v2627_v54 = vadd.f32 %v3506_v59, %v5015_v28  ;;  %v2348_v4 = vpop.f32.mrb[113].mxu0  ;;  %v2618_v10 = vpop.f32.mrb[153].mxu1  ;;  %v5368_v22 = vld [vmem:[#allocation16_spill] sm:$0xff] }
 0x246   :  { %v2619_v19 = vadd.f32 %v2618_v10, %v4993_v42  ;;  %v2349_v51 = vpop.f32.mrb[114].mxu0  ;;  %v3507_v8 = vpop.f32.mrb[154].mxu1 }
 0x247   :  { %v3030_v58 = vmax.f32 %v2627_v54, 0.0  ;;  %v5174_v2 = vadd.f32 %v2349_v51, %v5363_v11  ;;  %v2630_v20 = vadd.f32 %v3507_v8, %v5020_v14  ;;  %v2351_v32 = vpop.f32.mrb[115].mxu0  ;;  %v2621_v21 = vpop.f32.mrb[155].mxu1 }
 0x248   :  { %v3028_v27 = vmax.f32 %v2619_v19, 0.0  ;;  %v2622_v33 = vadd.f32 %v2621_v21, %v4998_v55 }
 0x249   :  { %3105 = vst [vmem:[%s5328_s2 + $0x150] sm:$0xff] %v3030_v58  ;;  %v3031_v28 = vmax.f32 %v2630_v20, 0.0  ;;  %v5369_v20 = vld [vmem:[#allocation17_spill] sm:$0xff] }
 0x24a   :  { %3103 = vst [vmem:[%s5328_s2 + $0x140] sm:$0xff] %v3028_v27  ;;  %v3029_v42 = vmax.f32 %v2622_v33, 0.0 }
 0x24b   :  { %3106 = vst [vmem:[%s5328_s2 + $0x158] sm:$0xff] %v3031_v28 }
 0x24c   :  { %3104 = vst [vmem:[%s5328_s2 + $0x148] sm:$0xff] %v3029_v42  ;;  %v2354_v14 = vpop.f32.mrb[116].mxu0  ;;  %v3510_v55 = vpop.f32.mrb[156].mxu1 }
 0x24d   :  { %v5191_v60 = vadd.f32 %v2354_v14, %v5364_v52  ;;  %v2643_v44 = vadd.f32 %v3510_v55, %v5059_v25  ;;  %v2356_v50 = vpop.f32.mrb[117].mxu0  ;;  %v2634_v24 = vpop.f32.mrb[157].mxu1  ;;  %v5370_v14 = vld [vmem:[#allocation18_spill] sm:$0xff] }
 0x24e   :  { %v2635_v18 = vadd.f32 %v2634_v24, %v5037_v38  ;;  %v2357_v48 = vpop.f32.mrb[118].mxu0  ;;  %v3511_v7 = vpop.f32.mrb[158].mxu1 }
 0x24f   :  { %v3034_v1 = vmax.f32 %v2643_v44, 0.0  ;;  %v5196_v35 = vadd.f32 %v2357_v48, %v5365_v61  ;;  %v2646_v17 = vadd.f32 %v3511_v7, %v5064_v34  ;;  %v2359_v39 = vpop.f32.mrb[119].mxu0  ;;  %v2637_v31 = vpop.f32.mrb[159].mxu1 }
 0x250   :  { %v3032_v45 = vmax.f32 %v2635_v18, 0.0  ;;  %v2638_v36 = vadd.f32 %v2637_v31, %v5042_v41 }
 0x251   :  { %3109 = vst [vmem:[%s5328_s2 + $0x170] sm:$0xff] %v3034_v1  ;;  %v3035_v25 = vmax.f32 %v2646_v17, 0.0  ;;  %v5371_v1 = vld [vmem:[#allocation19_spill] sm:$0xff] }
 0x252   :  { %3107 = vst [vmem:[%s5328_s2 + $0x160] sm:$0xff] %v3032_v45  ;;  %v3033_v38 = vmax.f32 %v2638_v36, 0.0 }
 0x253   :  { %3110 = vst [vmem:[%s5328_s2 + $0x178] sm:$0xff] %v3035_v25  ;;  %v5372_v25 = vld [vmem:[#allocation20_spill] sm:$0xff] }
 0x254   :  { %3108 = vst [vmem:[%s5328_s2 + $0x168] sm:$0xff] %v3033_v38  ;;  %v2362_v34 = vpop.f32.mrb[120].mxu0  ;;  %v3514_v41 = vpop.f32.mrb[160].mxu1 }
 0x255   :  { %v5213_v43 = vadd.f32 %v2362_v34, %v5366_v12  ;;  %v2659_v57 = vadd.f32 %v3514_v41, %v5103_v46  ;;  %v2364_v5 = vpop.f32.mrb[121].mxu0  ;;  %v2650_v49 = vpop.f32.mrb[161].mxu1 }
 0x256   :  { %v2651_v13 = vadd.f32 %v2650_v49, %v5081_v30  ;;  %v2365_v23 = vpop.f32.mrb[122].mxu0  ;;  %v3515_v16 = vpop.f32.mrb[162].mxu1 }
 0x257   :  { %v3038_v56 = vmax.f32 %v2659_v57, 0.0  ;;  %v5218_v37 = vadd.f32 %v2365_v23, %v5367_v15  ;;  %v2662_v9 = vadd.f32 %v3515_v16, %v5108_v3  ;;  %v2367_v6 = vpop.f32.mrb[123].mxu0  ;;  %v2653_v63 = vpop.f32.mrb[163].mxu1  ;;  %v5373_v23 = vld [vmem:[#allocation21_spill] sm:$0xff] }
 0x258   :  { %v3036_v47 = vmax.f32 %v2651_v13, 0.0  ;;  %v2654_v59 = vadd.f32 %v2653_v63, %v5086_v29 }
 0x259   :  { %3113 = vst [vmem:[%s5328_s2 + $0x190] sm:$0xff] %v3038_v56  ;;  %v3039_v46 = vmax.f32 %v2662_v9, 0.0 }
 0x25a   :  { %3111 = vst [vmem:[%s5328_s2 + $0x180] sm:$0xff] %v3036_v47  ;;  %v3037_v30 = vmax.f32 %v2654_v59, 0.0 }
 0x25b   :  { %3114 = vst [vmem:[%s5328_s2 + $0x198] sm:$0xff] %v3039_v46  ;;  %v5374_v46 = vld [vmem:[#allocation22_spill] sm:$0xff] }
 0x25c   :  { %3112 = vst [vmem:[%s5328_s2 + $0x188] sm:$0xff] %v3037_v30  ;;  %v2370_v3 = vpop.f32.mrb[124].mxu0  ;;  %v3518_v29 = vpop.f32.mrb[164].mxu1 }
 0x25d   :  { %v2371_v54 = vadd.f32 %v2370_v3, %v5368_v22  ;;  %v2675_v4 = vadd.f32 %v3518_v29, %v5147_v53  ;;  %v2372_v10 = vpop.f32.mrb[125].mxu0  ;;  %v2666_v19 = vpop.f32.mrb[165].mxu1 }
 0x25e   :  { %v2667_v51 = vadd.f32 %v2666_v19, %v5125_v40  ;;  %v2373_v8 = vpop.f32.mrb[126].mxu0  ;;  %v3519_v58 = vpop.f32.mrb[166].mxu1 }
 0x25f   :  { %v3042_v11 = vmax.f32 %v2675_v4, 0.0  ;;  %v2374_v32 = vadd.f32 %v2373_v8, %v5369_v20  ;;  %v2678_v21 = vadd.f32 %v3519_v58, %v5152_v0  ;;  %v2375_v27 = vpop.f32.mrb[127].mxu0  ;;  %v2669_v33 = vpop.f32.mrb[167].mxu1 }
 0x260   :  { %v3040_v28 = vmax.f32 %v2667_v51, 0.0  ;;  %v2670_v42 = vadd.f32 %v2669_v33, %v5130_v62  ;;  %v5375_v51 = vld [vmem:[#allocation23_spill] sm:$0xff] }
 0x261   :  { %3117 = vst [vmem:[%s5328_s2 + $0x1b0] sm:$0xff] %v3042_v11  ;;  %v3043_v53 = vmax.f32 %v2678_v21, 0.0 }
 0x262   :  { %3115 = vst [vmem:[%s5328_s2 + $0x1a0] sm:$0xff] %v3040_v28  ;;  %v3041_v40 = vmax.f32 %v2670_v42, 0.0 }
 0x263   :  { %3118 = vst [vmem:[%s5328_s2 + $0x1b8] sm:$0xff] %v3043_v53  ;;  %v5376_v53 = vld [vmem:[#allocation24_spill] sm:$0xff] }
 0x264   :  { %3116 = vst [vmem:[%s5328_s2 + $0x1a8] sm:$0xff] %v3041_v40  ;;  %v2378_v0 = vpop.f32.mrb[128].mxu0  ;;  %v3522_v62 = vpop.f32.mrb[168].mxu1 }
 0x265   :  { %v2379_v55 = vadd.f32 %v2378_v0, %v5370_v14  ;;  %v2691_v52 = vadd.f32 %v3522_v62, %v5191_v60  ;;  %v2380_v44 = vpop.f32.mrb[129].mxu0  ;;  %v2682_v50 = vpop.f32.mrb[169].mxu1 }
 0x266   :  { %v2683_v24 = vadd.f32 %v2682_v50, %v5169_v26  ;;  %v2381_v18 = vpop.f32.mrb[130].mxu0  ;;  %v3523_v48 = vpop.f32.mrb[170].mxu1  ;;  %v5377_v50 = vld [vmem:[#allocation25_spill] sm:$0xff] }
 0x267   :  { %v3046_v7 = vmax.f32 %v2691_v52, 0.0  ;;  %v2382_v61 = vadd.f32 %v2381_v18, %v5371_v1  ;;  %v2694_v17 = vadd.f32 %v3523_v48, %v5196_v35  ;;  %v2383_v39 = vpop.f32.mrb[131].mxu0  ;;  %v2685_v31 = vpop.f32.mrb[171].mxu1 }
 0x268   :  { %v3044_v45 = vmax.f32 %v2683_v24, 0.0  ;;  %v2686_v36 = vadd.f32 %v2685_v31, %v5174_v2 }
 0x269   :  { %3121 = vst [vmem:[%s5328_s2 + $0x1d0] sm:$0xff] %v3046_v7  ;;  %v3047_v60 = vmax.f32 %v2694_v17, 0.0 }
 0x26a   :  { %3119 = vst [vmem:[%s5328_s2 + $0x1c0] sm:$0xff] %v3044_v45  ;;  %v3045_v26 = vmax.f32 %v2686_v36, 0.0 }
 0x26b   :  { %3122 = vst [vmem:[%s5328_s2 + $0x1d8] sm:$0xff] %v3047_v60  ;;  %v5378_v60 = vld [vmem:[#allocation26_spill] sm:$0xff] }
 0x26c   :  { %3120 = vst [vmem:[%s5328_s2 + $0x1c8] sm:$0xff] %v3045_v26  ;;  %v2386_v35 = vpop.f32.mrb[132].mxu0  ;;  %v3526_v2 = vpop.f32.mrb[172].mxu1 }
 0x26d   :  { %v2387_v38 = vadd.f32 %v2386_v35, %v5372_v25  ;;  %v2707_v34 = vadd.f32 %v3526_v2, %v2371_v54  ;;  %v2388_v41 = vpop.f32.mrb[133].mxu0  ;;  %v2698_v12 = vpop.f32.mrb[173].mxu1 }
 0x26e   :  { %v2699_v57 = vadd.f32 %v2698_v12, %v5213_v43  ;;  %v2389_v5 = vpop.f32.mrb[134].mxu0  ;;  %v3527_v49 = vpop.f32.mrb[174].mxu1 }
 0x26f   :  { %v3050_v13 = vmax.f32 %v2707_v34, 0.0  ;;  %v2390_v16 = vadd.f32 %v2389_v5, %v5373_v23  ;;  %v2710_v56 = vadd.f32 %v3527_v49, %v2374_v32  ;;  %v2391_v15 = vpop.f32.mrb[135].mxu0  ;;  %v2701_v9 = vpop.f32.mrb[175].mxu1  ;;  %v5379_v34 = vld [vmem:[#allocation27_spill] sm:$0xff] }
 0x270   :  { %v3048_v6 = vmax.f32 %v2699_v57, 0.0  ;;  %v2702_v63 = vadd.f32 %v2701_v9, %v5218_v37 }
 0x271   :  { %3125 = vst [vmem:[%s5328_s2 + $0x1f0] sm:$0xff] %v3050_v13  ;;  %v3051_v47 = vmax.f32 %v2710_v56, 0.0  ;;  %v5380_v56 = vld [vmem:[#allocation28_spill] sm:$0xff] }
 0x272   :  { %3123 = vst [vmem:[%s5328_s2 + $0x1e0] sm:$0xff] %v3048_v6  ;;  %v3049_v43 = vmax.f32 %v2702_v63, 0.0 }
 0x273   :  { %3126 = vst [vmem:[%s5328_s2 + $0x1f8] sm:$0xff] %v3051_v47 }
 0x274   :  { %3124 = vst [vmem:[%s5328_s2 + $0x1e8] sm:$0xff] %v3049_v43  ;;  %v2394_v59 = vpop.f32.mrb[136].mxu0  ;;  %v3530_v37 = vpop.f32.mrb[176].mxu1 }
 0x275   :  { %v2395_v30 = vadd.f32 %v2394_v59, %v5374_v46  ;;  %v2723_v3 = vadd.f32 %v3530_v37, %v2387_v38  ;;  %v2396_v29 = vpop.f32.mrb[137].mxu0  ;;  %v2714_v22 = vpop.f32.mrb[177].mxu1 }
 0x276   :  { %v2715_v54 = vadd.f32 %v2714_v22, %v2379_v55  ;;  %v2397_v4 = vpop.f32.mrb[138].mxu0  ;;  %v3531_v10 = vpop.f32.mrb[178].mxu1 }
 0x277   :  { %v3054_v19 = vmax.f32 %v2723_v3, 0.0  ;;  %v2398_v8 = vadd.f32 %v2397_v4, %v5375_v51  ;;  %v2726_v58 = vadd.f32 %v3531_v10, %v2390_v16  ;;  %v2399_v11 = vpop.f32.mrb[139].mxu0  ;;  %v2717_v20 = vpop.f32.mrb[179].mxu1 }
 0x278   :  { %v3052_v32 = vmax.f32 %v2715_v54, 0.0  ;;  %v2718_v21 = vadd.f32 %v2717_v20, %v2382_v61 }
 0x279   :  { %3129 = vst [vmem:[%s5328_s2 + $0x210] sm:$0xff] %v3054_v19  ;;  %v3055_v27 = vmax.f32 %v2726_v58, 0.0 }
 0x27a   :  { %3127 = vst [vmem:[%s5328_s2 + $0x200] sm:$0xff] %v3052_v32  ;;  %v3053_v33 = vmax.f32 %v2718_v21, 0.0 }
 0x27b   :  { %3130 = vst [vmem:[%s5328_s2 + $0x218] sm:$0xff] %v3055_v27 }
 0x27c   :  { %3128 = vst [vmem:[%s5328_s2 + $0x208] sm:$0xff] %v3053_v33  ;;  %v2402_v28 = vpop.f32.mrb[140].mxu0  ;;  %v3534_v42 = vpop.f32.mrb[180].mxu1 }
 0x27d   :  { %v2403_v40 = vadd.f32 %v2402_v28, %v5376_v53  ;;  %v2404_v0 = vpop.f32.mrb[141].mxu0  ;;  %v2730_v62 = vpop.f32.mrb[181].mxu1 }
 0x27e   :  { %v2731_v14 = vadd.f32 %v2730_v62, %v2395_v30  ;;  %v2405_v55 = vpop.f32.mrb[142].mxu0  ;;  %v3535_v52 = vpop.f32.mrb[182].mxu1 }
 0x27f   :  { %v2739_v44 = vadd.f32 %v3534_v42, %v2403_v40  ;;  %v2406_v24 = vadd.f32 %v2405_v55, %v5377_v50  ;;  %v2407_v18 = vpop.f32.mrb[143].mxu0  ;;  %v2733_v48 = vpop.f32.mrb[183].mxu1 }
 0x280   :  { %v3056_v7 = vmax.f32 %v2731_v14, 0.0  ;;  %v2734_v1 = vadd.f32 %v2733_v48, %v2398_v8 }
 0x281   :  { %v3058_v61 = vmax.f32 %v2739_v44, 0.0  ;;  %v2742_v17 = vadd.f32 %v3535_v52, %v2406_v24 }
 0x282   :  { %3131 = vst [vmem:[%s5328_s2 + $0x220] sm:$0xff] %v3056_v7  ;;  %v3057_v39 = vmax.f32 %v2734_v1, 0.0 }
 0x283   :  { %3133 = vst [vmem:[%s5328_s2 + $0x230] sm:$0xff] %v3058_v61  ;;  %v3059_v31 = vmax.f32 %v2742_v17, 0.0 }
 0x284   :  { %3132 = vst [vmem:[%s5328_s2 + $0x228] sm:$0xff] %v3057_v39  ;;  %v2410_v45 = vpop.f32.mrb[144].mxu0  ;;  %v3538_v36 = vpop.f32.mrb[184].mxu1 }
 0x285   :  { %3134 = vst [vmem:[%s5328_s2 + $0x238] sm:$0xff] %v3059_v31  ;;  %v2411_v26 = vadd.f32 %v2410_v45, %v5378_v60  ;;  %v2412_v35 = vpop.f32.mrb[145].mxu0  ;;  %v2746_v2 = vpop.f32.mrb[185].mxu1 }
 0x286   :  { %v2413_v25 = vpop.f32.mrb[146].mxu0  ;;  %v3539_v38 = vpop.f32.mrb[186].mxu1 }
 0x287   :  { %v2414_v41 = vadd.f32 %v2413_v25, %v5379_v34  ;;  %v2747_v12 = vadd.f32 %v2746_v2, %v2411_v26  ;;  %v2415_v57 = vpop.f32.mrb[147].mxu0  ;;  %v2749_v5 = vpop.f32.mrb[187].mxu1 }
 0x289   :  { %v3060_v49 = vmax.f32 %v2747_v12, 0.0  ;;  %v2750_v13 = vadd.f32 %v2749_v5, %v2414_v41 }
 0x28b   :  { %3135 = vst [vmem:[%s5328_s2 + $0x240] sm:$0xff] %v3060_v49  ;;  %v3061_v23 = vmax.f32 %v2750_v13, 0.0 }
 0x28c   :  { %v2418_v16 = vpop.f32.mrb[148].mxu0 }
 0x28d   :  { %3136 = vst [vmem:[%s5328_s2 + $0x248] sm:$0xff] %v3061_v23  ;;  %v2419_v15 = vadd.f32 %v2418_v16, %v5380_v56  ;;  %v2420_v9 = vpop.f32.mrb[149].mxu0 }
 0x28e   :  { %v2421_v6 = vpop.f32.mrb[150].mxu0 }
 0x28f   :  { %v2755_v63 = vadd.f32 %v3538_v36, %v2419_v15  ;;  %v2422_v47 = vpop.f32.mrb[151].mxu0 }
 0x291   :  { %v3062_v43 = vmax.f32 %v2755_v63, 0.0 }
 0x293   :  { %3137 = vst [vmem:[%s5328_s2 + $0x250] sm:$0xff] %v3062_v43 }

</bundles_post_ra>
